<compile_context>
chip_gen: v6e
topology: v6e:2x2x1
jax: 0.10.0
libtpu: 0.0.40
codegen_flags: <defaults>
</compile_context>

<pallas_src>
import functools
import math

import jax
import jax.numpy as jnp
from jax.experimental import pallas as pl
from jax.experimental.pallas import tpu as pltpu  # noqa: F401  (TPU backend extensions)

# ---------------- config (small synthetic BERT) ----------------
VOCAB = 100
TYPE_VOCAB = 2
MAX_POS = 16
HIDDEN = 32
NUM_HEADS = 2
HEAD_DIM = HIDDEN // NUM_HEADS
INTERMEDIATE = 128
NUM_LAYERS = 2
NUM_LABELS = 2
SEQ = 8
BATCH = 2
LN_EPS = 1e-12


# ---------------- the single fused Pallas kernel ----------------
def _bert_forward_kernel(x_ref, mask_ref,
                         emb_ln_g_ref, emb_ln_b_ref,
                         qkv_w_ref, qkv_b_ref,
                         ao_w_ref, ao_b_ref, ln1_g_ref, ln1_b_ref,
                         i_w_ref, i_b_ref, o_w_ref, o_b_ref,
                         ln2_g_ref, ln2_b_ref,
                         pool_w_ref, pool_b_ref, cls_w_ref, cls_b_ref,
                         logits_ref,
                         *, batch, seq, num_heads, head_dim, num_layers):
    """Full BERT forward (post-embedding-gather) resident in VMEM."""
    hidden = num_heads * head_dim
    m = batch * seq
    scale = 1.0 / math.sqrt(head_dim)

    def layer_norm(v, g, b):
        mu = jnp.mean(v, axis=-1, keepdims=True)
        var = jnp.mean((v - mu) ** 2, axis=-1, keepdims=True)
        return (v - mu) * jax.lax.rsqrt(var + LN_EPS) * g + b

    # ---- embedding LayerNorm (prologue; no standalone launch) ----
    x = layer_norm(x_ref[...], emb_ln_g_ref[...], emb_ln_b_ref[...])    # [M,H] f32

    # ---- hoisted additive mask, replicated per head on the batch axis ----
    mask = mask_ref[...]                                                 # [B,1,S]
    mask_bn = jnp.concatenate([mask] * num_heads, axis=0)                # [nH*B,1,S]

    # ---- encoder layers: static unroll, stacked weights indexed by l ----
    for l in range(num_layers):
        x_bf = x.astype(jnp.bfloat16)

        # fused Q|K|V projection: one MXU matmul per layer
        qkv = jnp.dot(x_bf, qkv_w_ref[l], preferred_element_type=jnp.float32)
        qkv = (qkv + qkv_b_ref[l]).reshape(batch, seq, 3 * hidden)       # [B,S,3H]

        # fold heads into the einsum batch dim: [nH*B, S, Dh]
        q_parts, k_parts, v_parts = [], [], []
        for h in range(num_heads):
            lo = h * head_dim
            q_parts.append(qkv[:, :, lo:lo + head_dim])
            k_parts.append(qkv[:, :, hidden + lo:hidden + lo + head_dim])
            v_parts.append(qkv[:, :, 2 * hidden + lo:2 * hidden + lo + head_dim])
        q = (jnp.concatenate(q_parts, axis=0) * scale).astype(jnp.bfloat16)
        k = jnp.concatenate(k_parts, axis=0).astype(jnp.bfloat16)
        v = jnp.concatenate(v_parts, axis=0).astype(jnp.bfloat16)

        # one score einsum + one context einsum covering all batches & heads
        s = jnp.einsum('nqd,nkd->nqk', q, k,
                       preferred_element_type=jnp.float32)               # [nH*B,S,S]
        s = s + mask_bn
        s = s - jnp.max(s, axis=-1, keepdims=True)
        p = jnp.exp(s)
        p = p * pl.reciprocal(jnp.sum(p, axis=-1, keepdims=True), approx=True)
        ctx = jnp.einsum('nqk,nkd->nqd', p.astype(jnp.bfloat16), v,
                         preferred_element_type=jnp.float32)             # [nH*B,S,Dh]

        # merge heads on the lane axis -> single output-projection matmul
        ctx = jnp.concatenate(
            [ctx[h * batch:(h + 1) * batch] for h in range(num_heads)], axis=-1)
        attn = jnp.dot(ctx.reshape(m, hidden).astype(jnp.bfloat16), ao_w_ref[l],
                       preferred_element_type=jnp.float32) + ao_b_ref[l]

        # residual + LayerNorm (fused epilogue, f32)
        x1 = layer_norm(attn + x, ln1_g_ref[l], ln1_b_ref[l])

        # feed-forward: GELU(x1 Wi + bi) Wo + bo, residual + LayerNorm
        inter = jnp.dot(x1.astype(jnp.bfloat16), i_w_ref[l],
                        preferred_element_type=jnp.float32) + i_b_ref[l]
        # TODO(synk): HF BERT uses the exact erf-based GELU; the tanh
        # approximation is used here to stay on guaranteed Mosaic lowerings
        # (difference < 1e-3 on activations).
        c = math.sqrt(2.0 / math.pi)
        inter = 0.5 * inter * (1.0 + jnp.tanh(c * (inter + 0.044715 * inter * inter * inter)))
        ffn = jnp.dot(inter.astype(jnp.bfloat16), o_w_ref[l],
                      preferred_element_type=jnp.float32) + o_b_ref[l]

        x = layer_norm(ffn + x1, ln2_g_ref[l], ln2_b_ref[l])

    # ---- pooler (tanh on [CLS]) + classifier fused as the epilogue ----
    cls_tok = x.reshape(batch, seq, hidden)[:, 0, :]                     # [B,H]
    pooled = jnp.tanh(jnp.dot(cls_tok, pool_w_ref[...],
                              preferred_element_type=jnp.float32) + pool_b_ref[...])
    logits_ref[...] = jnp.dot(pooled, cls_w_ref[...],
                              preferred_element_type=jnp.float32) + cls_b_ref[...]


# ---------------- parameter init (deterministic, synthetic, stacked) ---------
def init_params(key):
    keys = iter(jax.random.split(key, 5 + NUM_LAYERS * 4))

    def normal(shape, std=0.02):
        return jax.random.normal(next(keys), shape, dtype=jnp.float32) * std

    params = {
        "word_emb": normal((VOCAB, HIDDEN)),
        "pos_emb": normal((MAX_POS, HIDDEN)),
        "type_emb": normal((TYPE_VOCAB, HIDDEN)),
        "emb_ln_g": jnp.ones((1, HIDDEN), jnp.float32),
        "emb_ln_b": jnp.zeros((1, HIDDEN), jnp.float32),
        "pool_w": normal((HIDDEN, HIDDEN)),
        "pool_b": jnp.zeros((1, HIDDEN), jnp.float32),
        "cls_w": normal((HIDDEN, NUM_LABELS)),
        "cls_b": jnp.zeros((1, NUM_LABELS), jnp.float32),
    }

    # Per-layer weights stacked into [L, ...] arrays so a single fused kernel
    # can iterate layers without 14 x L separate arguments. Matmul weights are
    # stored bf16 (MXU-native); biases / LN params stay f32.
    qkv_ws, ao_ws, i_ws, o_ws = [], [], [], []
    for _ in range(NUM_LAYERS):
        qkv_ws.append(normal((HIDDEN, 3 * HIDDEN)))
        ao_ws.append(normal((HIDDEN, HIDDEN)))
        i_ws.append(normal((HIDDEN, INTERMEDIATE)))
        o_ws.append(normal((INTERMEDIATE, HIDDEN)))
    params.update({
        "qkv_w": jnp.stack(qkv_ws).astype(jnp.bfloat16),                 # [L,H,3H]
        "qkv_b": jnp.zeros((NUM_LAYERS, 1, 3 * HIDDEN), jnp.float32),
        "ao_w": jnp.stack(ao_ws).astype(jnp.bfloat16),                   # [L,H,H]
        "ao_b": jnp.zeros((NUM_LAYERS, 1, HIDDEN), jnp.float32),
        "attn_ln_g": jnp.ones((NUM_LAYERS, 1, HIDDEN), jnp.float32),
        "attn_ln_b": jnp.zeros((NUM_LAYERS, 1, HIDDEN), jnp.float32),
        "i_w": jnp.stack(i_ws).astype(jnp.bfloat16),                     # [L,H,I]
        "i_b": jnp.zeros((NUM_LAYERS, 1, INTERMEDIATE), jnp.float32),
        "o_w": jnp.stack(o_ws).astype(jnp.bfloat16),                     # [L,I,H]
        "o_b": jnp.zeros((NUM_LAYERS, 1, HIDDEN), jnp.float32),
        "out_ln_g": jnp.ones((NUM_LAYERS, 1, HIDDEN), jnp.float32),
        "out_ln_b": jnp.zeros((NUM_LAYERS, 1, HIDDEN), jnp.float32),
    })
    return params


# ---------------- forward pass (MixedQATBERT.forward == BERT forward) --------
def mixed_qat_bert_forward(params, input_ids, attention_mask, token_type_ids):
    B, S = input_ids.shape
    H = HIDDEN

    # Embedding gathers are glue (plain jnp); everything downstream — embedding
    # LN, both encoder layers, pooler, classifier — is ONE Pallas launch.
    emb = (params["word_emb"][input_ids]
           + params["pos_emb"][jnp.arange(S)][None, :, :]
           + params["type_emb"][token_type_ids])                         # [B,S,H]
    x = emb.reshape(B * S, H).astype(jnp.float32)

    # Additive attention mask: [B, 1, S], 0 for tokens, -10000 for padding.
    mask_add = (1.0 - attention_mask.astype(jnp.float32))[:, None, :] * -10000.0

    kernel = functools.partial(
        _bert_forward_kernel, batch=B, seq=S,
        num_heads=NUM_HEADS, head_dim=HEAD_DIM, num_layers=NUM_LAYERS)

    # Total model state is ~50 KB: everything fits in VMEM, gridless single call.
    logits = pl.pallas_call(
        kernel,
        out_shape=jax.ShapeDtypeStruct((B, NUM_LABELS), jnp.float32),
    )(x, mask_add,
      params["emb_ln_g"], params["emb_ln_b"],
      params["qkv_w"], params["qkv_b"],
      params["ao_w"], params["ao_b"], params["attn_ln_g"], params["attn_ln_b"],
      params["i_w"], params["i_b"], params["o_w"], params["o_b"],
      params["out_ln_g"], params["out_ln_b"],
      params["pool_w"], params["pool_b"], params["cls_w"], params["cls_b"])
    # TODO(synk): when labels are supplied the HF model also returns a CE loss;
    # here we return logits only (labels=None path).
    return logits


if __name__ == "__main__":
    key = jax.random.PRNGKey(0)
    pkey, ikey = jax.random.split(key)
    params = init_params(pkey)

    input_ids = jax.random.randint(ikey, (BATCH, SEQ), 0, VOCAB, dtype=jnp.int32)
    attention_mask = jnp.ones((BATCH, SEQ), dtype=jnp.int32)
    # mask out the last two positions of the second sequence (padding)
    attention_mask = attention_mask.at[1, -2:].set(0)
    token_type_ids = jnp.zeros((BATCH, SEQ), dtype=jnp.int32)

    fwd = jax.jit(mixed_qat_bert_forward)
    logits = fwd(params, input_ids, attention_mask, token_type_ids)
    jax.block_until_ready(logits)
    assert logits.shape == (BATCH, NUM_LABELS)
    assert bool(jnp.all(jnp.isfinite(logits)))
    print("KERNEL_OK")
</pallas_src>

<mosaic_0001>
module attributes {stable_mosaic.version = 11 : i64} {
  func.func @_bert_forward_kernel(%arg0: memref<16x32xf32, #tpu.memory_space<vmem>>, %arg1: memref<2x1x8xf32, #tpu.memory_space<vmem>>, %arg2: memref<1x32xf32, #tpu.memory_space<vmem>>, %arg3: memref<1x32xf32, #tpu.memory_space<vmem>>, %arg4: memref<2x32x96xbf16, #tpu.memory_space<vmem>>, %arg5: memref<2x1x96xf32, #tpu.memory_space<vmem>>, %arg6: memref<2x32x32xbf16, #tpu.memory_space<vmem>>, %arg7: memref<2x1x32xf32, #tpu.memory_space<vmem>>, %arg8: memref<2x1x32xf32, #tpu.memory_space<vmem>>, %arg9: memref<2x1x32xf32, #tpu.memory_space<vmem>>, %arg10: memref<2x32x128xbf16, #tpu.memory_space<vmem>>, %arg11: memref<2x1x128xf32, #tpu.memory_space<vmem>>, %arg12: memref<2x128x32xbf16, #tpu.memory_space<vmem>>, %arg13: memref<2x1x32xf32, #tpu.memory_space<vmem>>, %arg14: memref<2x1x32xf32, #tpu.memory_space<vmem>>, %arg15: memref<2x1x32xf32, #tpu.memory_space<vmem>>, %arg16: memref<32x32xf32, #tpu.memory_space<vmem>>, %arg17: memref<1x32xf32, #tpu.memory_space<vmem>>, %arg18: memref<32x2xf32, #tpu.memory_space<vmem>>, %arg19: memref<1x2xf32, #tpu.memory_space<vmem>>, %arg20: memref<2x2xf32, #tpu.memory_space<vmem>>) attributes {dimension_semantics = [], scalar_prefetch = 0 : i64, scratch_operands = 0 : i64, tpu.core_type = #tpu.core_type<tc>} {
    %c0 = arith.constant 0 : index
    %c0_0 = arith.constant 0 : index
    %0 = vector.load %arg0[%c0, %c0_0] : memref<16x32xf32, #tpu.memory_space<vmem>>, vector<16x32xf32>
    %c0_1 = arith.constant 0 : index
    %c0_2 = arith.constant 0 : index
    %1 = vector.load %arg2[%c0_1, %c0_2] : memref<1x32xf32, #tpu.memory_space<vmem>>, vector<1x32xf32>
    %c0_3 = arith.constant 0 : index
    %c0_4 = arith.constant 0 : index
    %2 = vector.load %arg3[%c0_3, %c0_4] : memref<1x32xf32, #tpu.memory_space<vmem>>, vector<1x32xf32>
    %cst = arith.constant dense<0.000000e+00> : vector<16xf32>
    %3 = vector.multi_reduction <add>, %0, %cst [1] : vector<16x32xf32> to vector<16xf32>
    %4 = vector.shape_cast %3 : vector<16xf32> to vector<16x1xf32>
    %cst_5 = arith.constant 3.200000e+01 : f32
    %5 = vector.broadcast %cst_5 : f32 to vector<16x1xf32>
    %6 = arith.divf %4, %5 : vector<16x1xf32>
    %7 = vector.broadcast %6 : vector<16x1xf32> to vector<16x32xf32>
    %8 = arith.subf %0, %7 : vector<16x32xf32>
    %9 = arith.mulf %8, %8 : vector<16x32xf32>
    %cst_6 = arith.constant dense<0.000000e+00> : vector<16xf32>
    %10 = vector.multi_reduction <add>, %9, %cst_6 [1] : vector<16x32xf32> to vector<16xf32>
    %11 = vector.shape_cast %10 : vector<16xf32> to vector<16x1xf32>
    %cst_7 = arith.constant 3.200000e+01 : f32
    %12 = vector.broadcast %cst_7 : f32 to vector<16x1xf32>
    %13 = arith.divf %11, %12 : vector<16x1xf32>
    %14 = vector.broadcast %6 : vector<16x1xf32> to vector<16x32xf32>
    %15 = arith.subf %0, %14 : vector<16x32xf32>
    %cst_8 = arith.constant 9.99999996E-13 : f32
    %16 = vector.broadcast %cst_8 : f32 to vector<16x1xf32>
    %17 = arith.addf %13, %16 : vector<16x1xf32>
    %18 = math.rsqrt %17 : vector<16x1xf32>
    %19 = vector.broadcast %18 : vector<16x1xf32> to vector<16x32xf32>
    %20 = arith.mulf %15, %19 : vector<16x32xf32>
    %21 = vector.broadcast %1 : vector<1x32xf32> to vector<16x32xf32>
    %22 = arith.mulf %20, %21 : vector<16x32xf32>
    %23 = vector.broadcast %2 : vector<1x32xf32> to vector<16x32xf32>
    %24 = arith.addf %22, %23 : vector<16x32xf32>
    %c0_9 = arith.constant 0 : index
    %c0_10 = arith.constant 0 : index
    %c0_11 = arith.constant 0 : index
    %25 = vector.load %arg1[%c0_9, %c0_10, %c0_11] : memref<2x1x8xf32, #tpu.memory_space<vmem>>, vector<2x1x8xf32>
    %26 = tpu.concatenate %25, %25 in 0 : vector<2x1x8xf32>, vector<2x1x8xf32> -> vector<4x1x8xf32>
    %27 = arith.truncf %24 : vector<16x32xf32> to vector<16x32xbf16>
    %c0_12 = arith.constant 0 : index
    %c0_13 = arith.constant 0 : index
    %c0_14 = arith.constant 0 : index
    %28 = vector.load %arg4[%c0_12, %c0_13, %c0_14] : memref<2x32x96xbf16, #tpu.memory_space<vmem>>, vector<1x32x96xbf16>
    %29 = vector.shape_cast %28 : vector<1x32x96xbf16> to vector<32x96xbf16>
    %cst_15 = arith.constant dense<0.000000e+00> : vector<16x96xf32>
    %30 = tpu.matmul %27, %29, %cst_15 {dimension_numbers = #tpu.dot_dimension_numbers<[1], [0], [0], [1], [0, 0, 1, 1], [], []>} : vector<16x32xbf16>, vector<32x96xbf16>, vector<16x96xf32> -> vector<16x96xf32>
    %c0_16 = arith.constant 0 : index
    %c0_17 = arith.constant 0 : index
    %c0_18 = arith.constant 0 : index
    %31 = vector.load %arg5[%c0_16, %c0_17, %c0_18] : memref<2x1x96xf32, #tpu.memory_space<vmem>>, vector<1x1x96xf32>
    %32 = vector.shape_cast %31 : vector<1x1x96xf32> to vector<1x96xf32>
    %33 = vector.broadcast %32 : vector<1x96xf32> to vector<16x96xf32>
    %34 = arith.addf %30, %33 : vector<16x96xf32>
    %35 = vector.shape_cast %34 : vector<16x96xf32> to vector<2x8x96xf32>
    %36 = vector.extract_strided_slice %35 {offsets = [0, 0, 0], sizes = [2, 8, 16], strides = [1, 1, 1]} : vector<2x8x96xf32> to vector<2x8x16xf32>
    %37 = vector.extract_strided_slice %35 {offsets = [0, 0, 32], sizes = [2, 8, 16], strides = [1, 1, 1]} : vector<2x8x96xf32> to vector<2x8x16xf32>
    %38 = vector.extract_strided_slice %35 {offsets = [0, 0, 64], sizes = [2, 8, 16], strides = [1, 1, 1]} : vector<2x8x96xf32> to vector<2x8x16xf32>
    %39 = vector.extract_strided_slice %35 {offsets = [0, 0, 16], sizes = [2, 8, 16], strides = [1, 1, 1]} : vector<2x8x96xf32> to vector<2x8x16xf32>
    %40 = vector.extract_strided_slice %35 {offsets = [0, 0, 48], sizes = [2, 8, 16], strides = [1, 1, 1]} : vector<2x8x96xf32> to vector<2x8x16xf32>
    %41 = vector.extract_strided_slice %35 {offsets = [0, 0, 80], sizes = [2, 8, 16], strides = [1, 1, 1]} : vector<2x8x96xf32> to vector<2x8x16xf32>
    %42 = tpu.concatenate %36, %39 in 0 : vector<2x8x16xf32>, vector<2x8x16xf32> -> vector<4x8x16xf32>
    %cst_19 = arith.constant 2.500000e-01 : f32
    %43 = vector.broadcast %cst_19 : f32 to vector<4x8x16xf32>
    %44 = arith.mulf %42, %43 : vector<4x8x16xf32>
    %45 = arith.truncf %44 : vector<4x8x16xf32> to vector<4x8x16xbf16>
    %46 = tpu.concatenate %37, %40 in 0 : vector<2x8x16xf32>, vector<2x8x16xf32> -> vector<4x8x16xf32>
    %47 = arith.truncf %46 : vector<4x8x16xf32> to vector<4x8x16xbf16>
    %48 = tpu.concatenate %38, %41 in 0 : vector<2x8x16xf32>, vector<2x8x16xf32> -> vector<4x8x16xf32>
    %49 = arith.truncf %48 : vector<4x8x16xf32> to vector<4x8x16xbf16>
    "tpu.trace_start"() <{level = 10 : i32, message = "nqd,nkd->nqk"}> : () -> ()
    %cst_20 = arith.constant dense<0.000000e+00> : vector<4x8x8xf32>
    %50 = tpu.matmul %45, %47, %cst_20 {dimension_numbers = #tpu.dot_dimension_numbers<[2], [2], [1], [1], [0, 0, 0, 1, 1, 1], [0], [0]>} : vector<4x8x16xbf16>, vector<4x8x16xbf16>, vector<4x8x8xf32> -> vector<4x8x8xf32>
    "tpu.trace_stop"() : () -> ()
    %51 = vector.broadcast %26 : vector<4x1x8xf32> to vector<4x8x8xf32>
    %52 = arith.addf %50, %51 : vector<4x8x8xf32>
    %cst_21 = arith.constant dense<0xFF800000> : vector<4x8xf32>
    %53 = vector.multi_reduction <maximumf>, %52, %cst_21 [2] : vector<4x8x8xf32> to vector<4x8xf32>
    %54 = vector.shape_cast %53 : vector<4x8xf32> to vector<4x8x1xf32>
    %55 = vector.broadcast %54 : vector<4x8x1xf32> to vector<4x8x8xf32>
    %56 = arith.subf %52, %55 : vector<4x8x8xf32>
    %57 = math.exp %56 : vector<4x8x8xf32>
    %cst_22 = arith.constant dense<0.000000e+00> : vector<4x8xf32>
    %58 = vector.multi_reduction <add>, %57, %cst_22 [2] : vector<4x8x8xf32> to vector<4x8xf32>
    %59 = vector.shape_cast %58 : vector<4x8xf32> to vector<4x8x1xf32>
    %60 = tpu.reciprocal %59 {approx = true} : vector<4x8x1xf32> -> vector<4x8x1xf32>
    %61 = vector.broadcast %60 : vector<4x8x1xf32> to vector<4x8x8xf32>
    %62 = arith.mulf %57, %61 : vector<4x8x8xf32>
    %63 = arith.truncf %62 : vector<4x8x8xf32> to vector<4x8x8xbf16>
    "tpu.trace_start"() <{level = 10 : i32, message = "nqk,nkd->nqd"}> : () -> ()
    %cst_23 = arith.constant dense<0.000000e+00> : vector<4x8x16xf32>
    %64 = tpu.matmul %63, %49, %cst_23 {dimension_numbers = #tpu.dot_dimension_numbers<[2], [1], [1], [2], [0, 0, 0, 1, 1, 2], [0], [0]>} : vector<4x8x8xbf16>, vector<4x8x16xbf16>, vector<4x8x16xf32> -> vector<4x8x16xf32>
    "tpu.trace_stop"() : () -> ()
    %65 = vector.extract_strided_slice %64 {offsets = [0, 0, 0], sizes = [2, 8, 16], strides = [1, 1, 1]} : vector<4x8x16xf32> to vector<2x8x16xf32>
    %66 = vector.extract_strided_slice %64 {offsets = [2, 0, 0], sizes = [2, 8, 16], strides = [1, 1, 1]} : vector<4x8x16xf32> to vector<2x8x16xf32>
    %67 = tpu.concatenate %65, %66 in 2 : vector<2x8x16xf32>, vector<2x8x16xf32> -> vector<2x8x32xf32>
    %68 = vector.shape_cast %67 : vector<2x8x32xf32> to vector<16x32xf32>
    %69 = arith.truncf %68 : vector<16x32xf32> to vector<16x32xbf16>
    %c0_24 = arith.constant 0 : index
    %c0_25 = arith.constant 0 : index
    %c0_26 = arith.constant 0 : index
    %70 = vector.load %arg6[%c0_24, %c0_25, %c0_26] : memref<2x32x32xbf16, #tpu.memory_space<vmem>>, vector<1x32x32xbf16>
    %71 = vector.shape_cast %70 : vector<1x32x32xbf16> to vector<32x32xbf16>
    %cst_27 = arith.constant dense<0.000000e+00> : vector<16x32xf32>
    %72 = tpu.matmul %69, %71, %cst_27 {dimension_numbers = #tpu.dot_dimension_numbers<[1], [0], [0], [1], [0, 0, 1, 1], [], []>} : vector<16x32xbf16>, vector<32x32xbf16>, vector<16x32xf32> -> vector<16x32xf32>
    %c0_28 = arith.constant 0 : index
    %c0_29 = arith.constant 0 : index
    %c0_30 = arith.constant 0 : index
    %73 = vector.load %arg7[%c0_28, %c0_29, %c0_30] : memref<2x1x32xf32, #tpu.memory_space<vmem>>, vector<1x1x32xf32>
    %74 = vector.shape_cast %73 : vector<1x1x32xf32> to vector<1x32xf32>
    %75 = vector.broadcast %74 : vector<1x32xf32> to vector<16x32xf32>
    %76 = arith.addf %72, %75 : vector<16x32xf32>
    %77 = arith.addf %76, %24 : vector<16x32xf32>
    %c0_31 = arith.constant 0 : index
    %c0_32 = arith.constant 0 : index
    %c0_33 = arith.constant 0 : index
    %78 = vector.load %arg8[%c0_31, %c0_32, %c0_33] : memref<2x1x32xf32, #tpu.memory_space<vmem>>, vector<1x1x32xf32>
    %79 = vector.shape_cast %78 : vector<1x1x32xf32> to vector<1x32xf32>
    %c0_34 = arith.constant 0 : index
    %c0_35 = arith.constant 0 : index
    %c0_36 = arith.constant 0 : index
    %80 = vector.load %arg9[%c0_34, %c0_35, %c0_36] : memref<2x1x32xf32, #tpu.memory_space<vmem>>, vector<1x1x32xf32>
    %81 = vector.shape_cast %80 : vector<1x1x32xf32> to vector<1x32xf32>
    %cst_37 = arith.constant dense<0.000000e+00> : vector<16xf32>
    %82 = vector.multi_reduction <add>, %77, %cst_37 [1] : vector<16x32xf32> to vector<16xf32>
    %83 = vector.shape_cast %82 : vector<16xf32> to vector<16x1xf32>
    %cst_38 = arith.constant 3.200000e+01 : f32
    %84 = vector.broadcast %cst_38 : f32 to vector<16x1xf32>
    %85 = arith.divf %83, %84 : vector<16x1xf32>
    %86 = vector.broadcast %85 : vector<16x1xf32> to vector<16x32xf32>
    %87 = arith.subf %77, %86 : vector<16x32xf32>
    %88 = arith.mulf %87, %87 : vector<16x32xf32>
    %cst_39 = arith.constant dense<0.000000e+00> : vector<16xf32>
    %89 = vector.multi_reduction <add>, %88, %cst_39 [1] : vector<16x32xf32> to vector<16xf32>
    %90 = vector.shape_cast %89 : vector<16xf32> to vector<16x1xf32>
    %cst_40 = arith.constant 3.200000e+01 : f32
    %91 = vector.broadcast %cst_40 : f32 to vector<16x1xf32>
    %92 = arith.divf %90, %91 : vector<16x1xf32>
    %93 = vector.broadcast %85 : vector<16x1xf32> to vector<16x32xf32>
    %94 = arith.subf %77, %93 : vector<16x32xf32>
    %cst_41 = arith.constant 9.99999996E-13 : f32
    %95 = vector.broadcast %cst_41 : f32 to vector<16x1xf32>
    %96 = arith.addf %92, %95 : vector<16x1xf32>
    %97 = math.rsqrt %96 : vector<16x1xf32>
    %98 = vector.broadcast %97 : vector<16x1xf32> to vector<16x32xf32>
    %99 = arith.mulf %94, %98 : vector<16x32xf32>
    %100 = vector.broadcast %79 : vector<1x32xf32> to vector<16x32xf32>
    %101 = arith.mulf %99, %100 : vector<16x32xf32>
    %102 = vector.broadcast %81 : vector<1x32xf32> to vector<16x32xf32>
    %103 = arith.addf %101, %102 : vector<16x32xf32>
    %104 = arith.truncf %103 : vector<16x32xf32> to vector<16x32xbf16>
    %c0_42 = arith.constant 0 : index
    %c0_43 = arith.constant 0 : index
    %c0_44 = arith.constant 0 : index
    %105 = vector.load %arg10[%c0_42, %c0_43, %c0_44] : memref<2x32x128xbf16, #tpu.memory_space<vmem>>, vector<1x32x128xbf16>
    %106 = vector.shape_cast %105 : vector<1x32x128xbf16> to vector<32x128xbf16>
    %cst_45 = arith.constant dense<0.000000e+00> : vector<16x128xf32>
    %107 = tpu.matmul %104, %106, %cst_45 {dimension_numbers = #tpu.dot_dimension_numbers<[1], [0], [0], [1], [0, 0, 1, 1], [], []>} : vector<16x32xbf16>, vector<32x128xbf16>, vector<16x128xf32> -> vector<16x128xf32>
    %c0_46 = arith.constant 0 : index
    %c0_47 = arith.constant 0 : index
    %c0_48 = arith.constant 0 : index
    %108 = vector.load %arg11[%c0_46, %c0_47, %c0_48] : memref<2x1x128xf32, #tpu.memory_space<vmem>>, vector<1x1x128xf32>
    %109 = vector.shape_cast %108 : vector<1x1x128xf32> to vector<1x128xf32>
    %110 = vector.broadcast %109 : vector<1x128xf32> to vector<16x128xf32>
    %111 = arith.addf %107, %110 : vector<16x128xf32>
    %cst_49 = arith.constant 5.000000e-01 : f32
    %112 = vector.broadcast %cst_49 : f32 to vector<16x128xf32>
    %113 = arith.mulf %112, %111 : vector<16x128xf32>
    %cst_50 = arith.constant 4.471500e-02 : f32
    %114 = vector.broadcast %cst_50 : f32 to vector<16x128xf32>
    %115 = arith.mulf %114, %111 : vector<16x128xf32>
    %116 = arith.mulf %115, %111 : vector<16x128xf32>
    %117 = arith.mulf %116, %111 : vector<16x128xf32>
    %118 = arith.addf %111, %117 : vector<16x128xf32>
    %cst_51 = arith.constant 0.797884583 : f32
    %119 = vector.broadcast %cst_51 : f32 to vector<16x128xf32>
    %120 = arith.mulf %119, %118 : vector<16x128xf32>
    %121 = math.tanh %120 : vector<16x128xf32>
    %cst_52 = arith.constant 1.000000e+00 : f32
    %122 = vector.broadcast %cst_52 : f32 to vector<16x128xf32>
    %123 = arith.addf %122, %121 : vector<16x128xf32>
    %124 = arith.mulf %113, %123 : vector<16x128xf32>
    %125 = arith.truncf %124 : vector<16x128xf32> to vector<16x128xbf16>
    %c0_53 = arith.constant 0 : index
    %c0_54 = arith.constant 0 : index
    %c0_55 = arith.constant 0 : index
    %126 = vector.load %arg12[%c0_53, %c0_54, %c0_55] : memref<2x128x32xbf16, #tpu.memory_space<vmem>>, vector<1x128x32xbf16>
    %127 = vector.shape_cast %126 : vector<1x128x32xbf16> to vector<128x32xbf16>
    %cst_56 = arith.constant dense<0.000000e+00> : vector<16x32xf32>
    %128 = tpu.matmul %125, %127, %cst_56 {dimension_numbers = #tpu.dot_dimension_numbers<[1], [0], [0], [1], [0, 0, 1, 1], [], []>} : vector<16x128xbf16>, vector<128x32xbf16>, vector<16x32xf32> -> vector<16x32xf32>
    %c0_57 = arith.constant 0 : index
    %c0_58 = arith.constant 0 : index
    %c0_59 = arith.constant 0 : index
    %129 = vector.load %arg13[%c0_57, %c0_58, %c0_59] : memref<2x1x32xf32, #tpu.memory_space<vmem>>, vector<1x1x32xf32>
    %130 = vector.shape_cast %129 : vector<1x1x32xf32> to vector<1x32xf32>
    %131 = vector.broadcast %130 : vector<1x32xf32> to vector<16x32xf32>
    %132 = arith.addf %128, %131 : vector<16x32xf32>
    %133 = arith.addf %132, %103 : vector<16x32xf32>
    %c0_60 = arith.constant 0 : index
    %c0_61 = arith.constant 0 : index
    %c0_62 = arith.constant 0 : index
    %134 = vector.load %arg14[%c0_60, %c0_61, %c0_62] : memref<2x1x32xf32, #tpu.memory_space<vmem>>, vector<1x1x32xf32>
    %135 = vector.shape_cast %134 : vector<1x1x32xf32> to vector<1x32xf32>
    %c0_63 = arith.constant 0 : index
    %c0_64 = arith.constant 0 : index
    %c0_65 = arith.constant 0 : index
    %136 = vector.load %arg15[%c0_63, %c0_64, %c0_65] : memref<2x1x32xf32, #tpu.memory_space<vmem>>, vector<1x1x32xf32>
    %137 = vector.shape_cast %136 : vector<1x1x32xf32> to vector<1x32xf32>
    %cst_66 = arith.constant dense<0.000000e+00> : vector<16xf32>
    %138 = vector.multi_reduction <add>, %133, %cst_66 [1] : vector<16x32xf32> to vector<16xf32>
    %139 = vector.shape_cast %138 : vector<16xf32> to vector<16x1xf32>
    %cst_67 = arith.constant 3.200000e+01 : f32
    %140 = vector.broadcast %cst_67 : f32 to vector<16x1xf32>
    %141 = arith.divf %139, %140 : vector<16x1xf32>
    %142 = vector.broadcast %141 : vector<16x1xf32> to vector<16x32xf32>
    %143 = arith.subf %133, %142 : vector<16x32xf32>
    %144 = arith.mulf %143, %143 : vector<16x32xf32>
    %cst_68 = arith.constant dense<0.000000e+00> : vector<16xf32>
    %145 = vector.multi_reduction <add>, %144, %cst_68 [1] : vector<16x32xf32> to vector<16xf32>
    %146 = vector.shape_cast %145 : vector<16xf32> to vector<16x1xf32>
    %cst_69 = arith.constant 3.200000e+01 : f32
    %147 = vector.broadcast %cst_69 : f32 to vector<16x1xf32>
    %148 = arith.divf %146, %147 : vector<16x1xf32>
    %149 = vector.broadcast %141 : vector<16x1xf32> to vector<16x32xf32>
    %150 = arith.subf %133, %149 : vector<16x32xf32>
    %cst_70 = arith.constant 9.99999996E-13 : f32
    %151 = vector.broadcast %cst_70 : f32 to vector<16x1xf32>
    %152 = arith.addf %148, %151 : vector<16x1xf32>
    %153 = math.rsqrt %152 : vector<16x1xf32>
    %154 = vector.broadcast %153 : vector<16x1xf32> to vector<16x32xf32>
    %155 = arith.mulf %150, %154 : vector<16x32xf32>
    %156 = vector.broadcast %135 : vector<1x32xf32> to vector<16x32xf32>
    %157 = arith.mulf %155, %156 : vector<16x32xf32>
    %158 = vector.broadcast %137 : vector<1x32xf32> to vector<16x32xf32>
    %159 = arith.addf %157, %158 : vector<16x32xf32>
    %160 = arith.truncf %159 : vector<16x32xf32> to vector<16x32xbf16>
    %c1 = arith.constant 1 : index
    %c0_71 = arith.constant 0 : index
    %c0_72 = arith.constant 0 : index
    %161 = vector.load %arg4[%c1, %c0_71, %c0_72] : memref<2x32x96xbf16, #tpu.memory_space<vmem>>, vector<1x32x96xbf16>
    %162 = vector.shape_cast %161 : vector<1x32x96xbf16> to vector<32x96xbf16>
    %cst_73 = arith.constant dense<0.000000e+00> : vector<16x96xf32>
    %163 = tpu.matmul %160, %162, %cst_73 {dimension_numbers = #tpu.dot_dimension_numbers<[1], [0], [0], [1], [0, 0, 1, 1], [], []>} : vector<16x32xbf16>, vector<32x96xbf16>, vector<16x96xf32> -> vector<16x96xf32>
    %c1_74 = arith.constant 1 : index
    %c0_75 = arith.constant 0 : index
    %c0_76 = arith.constant 0 : index
    %164 = vector.load %arg5[%c1_74, %c0_75, %c0_76] : memref<2x1x96xf32, #tpu.memory_space<vmem>>, vector<1x1x96xf32>
    %165 = vector.shape_cast %164 : vector<1x1x96xf32> to vector<1x96xf32>
    %166 = vector.broadcast %165 : vector<1x96xf32> to vector<16x96xf32>
    %167 = arith.addf %163, %166 : vector<16x96xf32>
    %168 = vector.shape_cast %167 : vector<16x96xf32> to vector<2x8x96xf32>
    %169 = vector.extract_strided_slice %168 {offsets = [0, 0, 0], sizes = [2, 8, 16], strides = [1, 1, 1]} : vector<2x8x96xf32> to vector<2x8x16xf32>
    %170 = vector.extract_strided_slice %168 {offsets = [0, 0, 32], sizes = [2, 8, 16], strides = [1, 1, 1]} : vector<2x8x96xf32> to vector<2x8x16xf32>
    %171 = vector.extract_strided_slice %168 {offsets = [0, 0, 64], sizes = [2, 8, 16], strides = [1, 1, 1]} : vector<2x8x96xf32> to vector<2x8x16xf32>
    %172 = vector.extract_strided_slice %168 {offsets = [0, 0, 16], sizes = [2, 8, 16], strides = [1, 1, 1]} : vector<2x8x96xf32> to vector<2x8x16xf32>
    %173 = vector.extract_strided_slice %168 {offsets = [0, 0, 48], sizes = [2, 8, 16], strides = [1, 1, 1]} : vector<2x8x96xf32> to vector<2x8x16xf32>
    %174 = vector.extract_strided_slice %168 {offsets = [0, 0, 80], sizes = [2, 8, 16], strides = [1, 1, 1]} : vector<2x8x96xf32> to vector<2x8x16xf32>
    %175 = tpu.concatenate %169, %172 in 0 : vector<2x8x16xf32>, vector<2x8x16xf32> -> vector<4x8x16xf32>
    %cst_77 = arith.constant 2.500000e-01 : f32
    %176 = vector.broadcast %cst_77 : f32 to vector<4x8x16xf32>
    %177 = arith.mulf %175, %176 : vector<4x8x16xf32>
    %178 = arith.truncf %177 : vector<4x8x16xf32> to vector<4x8x16xbf16>
    %179 = tpu.concatenate %170, %173 in 0 : vector<2x8x16xf32>, vector<2x8x16xf32> -> vector<4x8x16xf32>
    %180 = arith.truncf %179 : vector<4x8x16xf32> to vector<4x8x16xbf16>
    %181 = tpu.concatenate %171, %174 in 0 : vector<2x8x16xf32>, vector<2x8x16xf32> -> vector<4x8x16xf32>
    %182 = arith.truncf %181 : vector<4x8x16xf32> to vector<4x8x16xbf16>
    "tpu.trace_start"() <{level = 10 : i32, message = "nqd,nkd->nqk"}> : () -> ()
    %cst_78 = arith.constant dense<0.000000e+00> : vector<4x8x8xf32>
    %183 = tpu.matmul %178, %180, %cst_78 {dimension_numbers = #tpu.dot_dimension_numbers<[2], [2], [1], [1], [0, 0, 0, 1, 1, 1], [0], [0]>} : vector<4x8x16xbf16>, vector<4x8x16xbf16>, vector<4x8x8xf32> -> vector<4x8x8xf32>
    "tpu.trace_stop"() : () -> ()
    %184 = vector.broadcast %26 : vector<4x1x8xf32> to vector<4x8x8xf32>
    %185 = arith.addf %183, %184 : vector<4x8x8xf32>
    %cst_79 = arith.constant dense<0xFF800000> : vector<4x8xf32>
    %186 = vector.multi_reduction <maximumf>, %185, %cst_79 [2] : vector<4x8x8xf32> to vector<4x8xf32>
    %187 = vector.shape_cast %186 : vector<4x8xf32> to vector<4x8x1xf32>
    %188 = vector.broadcast %187 : vector<4x8x1xf32> to vector<4x8x8xf32>
    %189 = arith.subf %185, %188 : vector<4x8x8xf32>
    %190 = math.exp %189 : vector<4x8x8xf32>
    %cst_80 = arith.constant dense<0.000000e+00> : vector<4x8xf32>
    %191 = vector.multi_reduction <add>, %190, %cst_80 [2] : vector<4x8x8xf32> to vector<4x8xf32>
    %192 = vector.shape_cast %191 : vector<4x8xf32> to vector<4x8x1xf32>
    %193 = tpu.reciprocal %192 {approx = true} : vector<4x8x1xf32> -> vector<4x8x1xf32>
    %194 = vector.broadcast %193 : vector<4x8x1xf32> to vector<4x8x8xf32>
    %195 = arith.mulf %190, %194 : vector<4x8x8xf32>
    %196 = arith.truncf %195 : vector<4x8x8xf32> to vector<4x8x8xbf16>
    "tpu.trace_start"() <{level = 10 : i32, message = "nqk,nkd->nqd"}> : () -> ()
    %cst_81 = arith.constant dense<0.000000e+00> : vector<4x8x16xf32>
    %197 = tpu.matmul %196, %182, %cst_81 {dimension_numbers = #tpu.dot_dimension_numbers<[2], [1], [1], [2], [0, 0, 0, 1, 1, 2], [0], [0]>} : vector<4x8x8xbf16>, vector<4x8x16xbf16>, vector<4x8x16xf32> -> vector<4x8x16xf32>
    "tpu.trace_stop"() : () -> ()
    %198 = vector.extract_strided_slice %197 {offsets = [0, 0, 0], sizes = [2, 8, 16], strides = [1, 1, 1]} : vector<4x8x16xf32> to vector<2x8x16xf32>
    %199 = vector.extract_strided_slice %197 {offsets = [2, 0, 0], sizes = [2, 8, 16], strides = [1, 1, 1]} : vector<4x8x16xf32> to vector<2x8x16xf32>
    %200 = tpu.concatenate %198, %199 in 2 : vector<2x8x16xf32>, vector<2x8x16xf32> -> vector<2x8x32xf32>
    %201 = vector.shape_cast %200 : vector<2x8x32xf32> to vector<16x32xf32>
    %202 = arith.truncf %201 : vector<16x32xf32> to vector<16x32xbf16>
    %c1_82 = arith.constant 1 : index
    %c0_83 = arith.constant 0 : index
    %c0_84 = arith.constant 0 : index
    %203 = vector.load %arg6[%c1_82, %c0_83, %c0_84] : memref<2x32x32xbf16, #tpu.memory_space<vmem>>, vector<1x32x32xbf16>
    %204 = vector.shape_cast %203 : vector<1x32x32xbf16> to vector<32x32xbf16>
    %cst_85 = arith.constant dense<0.000000e+00> : vector<16x32xf32>
    %205 = tpu.matmul %202, %204, %cst_85 {dimension_numbers = #tpu.dot_dimension_numbers<[1], [0], [0], [1], [0, 0, 1, 1], [], []>} : vector<16x32xbf16>, vector<32x32xbf16>, vector<16x32xf32> -> vector<16x32xf32>
    %c1_86 = arith.constant 1 : index
    %c0_87 = arith.constant 0 : index
    %c0_88 = arith.constant 0 : index
    %206 = vector.load %arg7[%c1_86, %c0_87, %c0_88] : memref<2x1x32xf32, #tpu.memory_space<vmem>>, vector<1x1x32xf32>
    %207 = vector.shape_cast %206 : vector<1x1x32xf32> to vector<1x32xf32>
    %208 = vector.broadcast %207 : vector<1x32xf32> to vector<16x32xf32>
    %209 = arith.addf %205, %208 : vector<16x32xf32>
    %210 = arith.addf %209, %159 : vector<16x32xf32>
    %c1_89 = arith.constant 1 : index
    %c0_90 = arith.constant 0 : index
    %c0_91 = arith.constant 0 : index
    %211 = vector.load %arg8[%c1_89, %c0_90, %c0_91] : memref<2x1x32xf32, #tpu.memory_space<vmem>>, vector<1x1x32xf32>
    %212 = vector.shape_cast %211 : vector<1x1x32xf32> to vector<1x32xf32>
    %c1_92 = arith.constant 1 : index
    %c0_93 = arith.constant 0 : index
    %c0_94 = arith.constant 0 : index
    %213 = vector.load %arg9[%c1_92, %c0_93, %c0_94] : memref<2x1x32xf32, #tpu.memory_space<vmem>>, vector<1x1x32xf32>
    %214 = vector.shape_cast %213 : vector<1x1x32xf32> to vector<1x32xf32>
    %cst_95 = arith.constant dense<0.000000e+00> : vector<16xf32>
    %215 = vector.multi_reduction <add>, %210, %cst_95 [1] : vector<16x32xf32> to vector<16xf32>
    %216 = vector.shape_cast %215 : vector<16xf32> to vector<16x1xf32>
    %cst_96 = arith.constant 3.200000e+01 : f32
    %217 = vector.broadcast %cst_96 : f32 to vector<16x1xf32>
    %218 = arith.divf %216, %217 : vector<16x1xf32>
    %219 = vector.broadcast %218 : vector<16x1xf32> to vector<16x32xf32>
    %220 = arith.subf %210, %219 : vector<16x32xf32>
    %221 = arith.mulf %220, %220 : vector<16x32xf32>
    %cst_97 = arith.constant dense<0.000000e+00> : vector<16xf32>
    %222 = vector.multi_reduction <add>, %221, %cst_97 [1] : vector<16x32xf32> to vector<16xf32>
    %223 = vector.shape_cast %222 : vector<16xf32> to vector<16x1xf32>
    %cst_98 = arith.constant 3.200000e+01 : f32
    %224 = vector.broadcast %cst_98 : f32 to vector<16x1xf32>
    %225 = arith.divf %223, %224 : vector<16x1xf32>
    %226 = vector.broadcast %218 : vector<16x1xf32> to vector<16x32xf32>
    %227 = arith.subf %210, %226 : vector<16x32xf32>
    %cst_99 = arith.constant 9.99999996E-13 : f32
    %228 = vector.broadcast %cst_99 : f32 to vector<16x1xf32>
    %229 = arith.addf %225, %228 : vector<16x1xf32>
    %230 = math.rsqrt %229 : vector<16x1xf32>
    %231 = vector.broadcast %230 : vector<16x1xf32> to vector<16x32xf32>
    %232 = arith.mulf %227, %231 : vector<16x32xf32>
    %233 = vector.broadcast %212 : vector<1x32xf32> to vector<16x32xf32>
    %234 = arith.mulf %232, %233 : vector<16x32xf32>
    %235 = vector.broadcast %214 : vector<1x32xf32> to vector<16x32xf32>
    %236 = arith.addf %234, %235 : vector<16x32xf32>
    %237 = arith.truncf %236 : vector<16x32xf32> to vector<16x32xbf16>
    %c1_100 = arith.constant 1 : index
    %c0_101 = arith.constant 0 : index
    %c0_102 = arith.constant 0 : index
    %238 = vector.load %arg10[%c1_100, %c0_101, %c0_102] : memref<2x32x128xbf16, #tpu.memory_space<vmem>>, vector<1x32x128xbf16>
    %239 = vector.shape_cast %238 : vector<1x32x128xbf16> to vector<32x128xbf16>
    %cst_103 = arith.constant dense<0.000000e+00> : vector<16x128xf32>
    %240 = tpu.matmul %237, %239, %cst_103 {dimension_numbers = #tpu.dot_dimension_numbers<[1], [0], [0], [1], [0, 0, 1, 1], [], []>} : vector<16x32xbf16>, vector<32x128xbf16>, vector<16x128xf32> -> vector<16x128xf32>
    %c1_104 = arith.constant 1 : index
    %c0_105 = arith.constant 0 : index
    %c0_106 = arith.constant 0 : index
    %241 = vector.load %arg11[%c1_104, %c0_105, %c0_106] : memref<2x1x128xf32, #tpu.memory_space<vmem>>, vector<1x1x128xf32>
    %242 = vector.shape_cast %241 : vector<1x1x128xf32> to vector<1x128xf32>
    %243 = vector.broadcast %242 : vector<1x128xf32> to vector<16x128xf32>
    %244 = arith.addf %240, %243 : vector<16x128xf32>
    %cst_107 = arith.constant 5.000000e-01 : f32
    %245 = vector.broadcast %cst_107 : f32 to vector<16x128xf32>
    %246 = arith.mulf %245, %244 : vector<16x128xf32>
    %cst_108 = arith.constant 4.471500e-02 : f32
    %247 = vector.broadcast %cst_108 : f32 to vector<16x128xf32>
    %248 = arith.mulf %247, %244 : vector<16x128xf32>
    %249 = arith.mulf %248, %244 : vector<16x128xf32>
    %250 = arith.mulf %249, %244 : vector<16x128xf32>
    %251 = arith.addf %244, %250 : vector<16x128xf32>
    %cst_109 = arith.constant 0.797884583 : f32
    %252 = vector.broadcast %cst_109 : f32 to vector<16x128xf32>
    %253 = arith.mulf %252, %251 : vector<16x128xf32>
    %254 = math.tanh %253 : vector<16x128xf32>
    %cst_110 = arith.constant 1.000000e+00 : f32
    %255 = vector.broadcast %cst_110 : f32 to vector<16x128xf32>
    %256 = arith.addf %255, %254 : vector<16x128xf32>
    %257 = arith.mulf %246, %256 : vector<16x128xf32>
    %258 = arith.truncf %257 : vector<16x128xf32> to vector<16x128xbf16>
    %c1_111 = arith.constant 1 : index
    %c0_112 = arith.constant 0 : index
    %c0_113 = arith.constant 0 : index
    %259 = vector.load %arg12[%c1_111, %c0_112, %c0_113] : memref<2x128x32xbf16, #tpu.memory_space<vmem>>, vector<1x128x32xbf16>
    %260 = vector.shape_cast %259 : vector<1x128x32xbf16> to vector<128x32xbf16>
    %cst_114 = arith.constant dense<0.000000e+00> : vector<16x32xf32>
    %261 = tpu.matmul %258, %260, %cst_114 {dimension_numbers = #tpu.dot_dimension_numbers<[1], [0], [0], [1], [0, 0, 1, 1], [], []>} : vector<16x128xbf16>, vector<128x32xbf16>, vector<16x32xf32> -> vector<16x32xf32>
    %c1_115 = arith.constant 1 : index
    %c0_116 = arith.constant 0 : index
    %c0_117 = arith.constant 0 : index
    %262 = vector.load %arg13[%c1_115, %c0_116, %c0_117] : memref<2x1x32xf32, #tpu.memory_space<vmem>>, vector<1x1x32xf32>
    %263 = vector.shape_cast %262 : vector<1x1x32xf32> to vector<1x32xf32>
    %264 = vector.broadcast %263 : vector<1x32xf32> to vector<16x32xf32>
    %265 = arith.addf %261, %264 : vector<16x32xf32>
    %266 = arith.addf %265, %236 : vector<16x32xf32>
    %c1_118 = arith.constant 1 : index
    %c0_119 = arith.constant 0 : index
    %c0_120 = arith.constant 0 : index
    %267 = vector.load %arg14[%c1_118, %c0_119, %c0_120] : memref<2x1x32xf32, #tpu.memory_space<vmem>>, vector<1x1x32xf32>
    %268 = vector.shape_cast %267 : vector<1x1x32xf32> to vector<1x32xf32>
    %c1_121 = arith.constant 1 : index
    %c0_122 = arith.constant 0 : index
    %c0_123 = arith.constant 0 : index
    %269 = vector.load %arg15[%c1_121, %c0_122, %c0_123] : memref<2x1x32xf32, #tpu.memory_space<vmem>>, vector<1x1x32xf32>
    %270 = vector.shape_cast %269 : vector<1x1x32xf32> to vector<1x32xf32>
    %cst_124 = arith.constant dense<0.000000e+00> : vector<16xf32>
    %271 = vector.multi_reduction <add>, %266, %cst_124 [1] : vector<16x32xf32> to vector<16xf32>
    %272 = vector.shape_cast %271 : vector<16xf32> to vector<16x1xf32>
    %cst_125 = arith.constant 3.200000e+01 : f32
    %273 = vector.broadcast %cst_125 : f32 to vector<16x1xf32>
    %274 = arith.divf %272, %273 : vector<16x1xf32>
    %275 = vector.broadcast %274 : vector<16x1xf32> to vector<16x32xf32>
    %276 = arith.subf %266, %275 : vector<16x32xf32>
    %277 = arith.mulf %276, %276 : vector<16x32xf32>
    %cst_126 = arith.constant dense<0.000000e+00> : vector<16xf32>
    %278 = vector.multi_reduction <add>, %277, %cst_126 [1] : vector<16x32xf32> to vector<16xf32>
    %279 = vector.shape_cast %278 : vector<16xf32> to vector<16x1xf32>
    %cst_127 = arith.constant 3.200000e+01 : f32
    %280 = vector.broadcast %cst_127 : f32 to vector<16x1xf32>
    %281 = arith.divf %279, %280 : vector<16x1xf32>
    %282 = vector.broadcast %274 : vector<16x1xf32> to vector<16x32xf32>
    %283 = arith.subf %266, %282 : vector<16x32xf32>
    %cst_128 = arith.constant 9.99999996E-13 : f32
    %284 = vector.broadcast %cst_128 : f32 to vector<16x1xf32>
    %285 = arith.addf %281, %284 : vector<16x1xf32>
    %286 = math.rsqrt %285 : vector<16x1xf32>
    %287 = vector.broadcast %286 : vector<16x1xf32> to vector<16x32xf32>
    %288 = arith.mulf %283, %287 : vector<16x32xf32>
    %289 = vector.broadcast %268 : vector<1x32xf32> to vector<16x32xf32>
    %290 = arith.mulf %288, %289 : vector<16x32xf32>
    %291 = vector.broadcast %270 : vector<1x32xf32> to vector<16x32xf32>
    %292 = arith.addf %290, %291 : vector<16x32xf32>
    %293 = vector.shape_cast %292 : vector<16x32xf32> to vector<2x8x32xf32>
    %294 = vector.extract_strided_slice %293 {offsets = [0, 0, 0], sizes = [2, 1, 32], strides = [1, 1, 1]} : vector<2x8x32xf32> to vector<2x1x32xf32>
    %295 = vector.shape_cast %294 : vector<2x1x32xf32> to vector<2x32xf32>
    %c0_129 = arith.constant 0 : index
    %c0_130 = arith.constant 0 : index
    %296 = vector.load %arg16[%c0_129, %c0_130] : memref<32x32xf32, #tpu.memory_space<vmem>>, vector<32x32xf32>
    %cst_131 = arith.constant dense<0.000000e+00> : vector<2x32xf32>
    %297 = tpu.matmul %295, %296, %cst_131 {dimension_numbers = #tpu.dot_dimension_numbers<[1], [0], [0], [1], [0, 0, 1, 1], [], []>} : vector<2x32xf32>, vector<32x32xf32>, vector<2x32xf32> -> vector<2x32xf32>
    %c0_132 = arith.constant 0 : index
    %c0_133 = arith.constant 0 : index
    %298 = vector.load %arg17[%c0_132, %c0_133] : memref<1x32xf32, #tpu.memory_space<vmem>>, vector<1x32xf32>
    %299 = vector.broadcast %298 : vector<1x32xf32> to vector<2x32xf32>
    %300 = arith.addf %297, %299 : vector<2x32xf32>
    %301 = math.tanh %300 : vector<2x32xf32>
    %c0_134 = arith.constant 0 : index
    %c0_135 = arith.constant 0 : index
    %302 = vector.load %arg18[%c0_134, %c0_135] : memref<32x2xf32, #tpu.memory_space<vmem>>, vector<32x2xf32>
    %cst_136 = arith.constant dense<0.000000e+00> : vector<2x2xf32>
    %303 = tpu.matmul %301, %302, %cst_136 {dimension_numbers = #tpu.dot_dimension_numbers<[1], [0], [0], [1], [0, 0, 1, 1], [], []>} : vector<2x32xf32>, vector<32x2xf32>, vector<2x2xf32> -> vector<2x2xf32>
    %c0_137 = arith.constant 0 : index
    %c0_138 = arith.constant 0 : index
    %304 = vector.load %arg19[%c0_137, %c0_138] : memref<1x2xf32, #tpu.memory_space<vmem>>, vector<1x2xf32>
    %305 = vector.broadcast %304 : vector<1x2xf32> to vector<2x2xf32>
    %306 = arith.addf %303, %305 : vector<2x2xf32>
    %c0_139 = arith.constant 0 : index
    %c0_140 = arith.constant 0 : index
    %307 = vector.load %arg20[%c0_139, %c0_140] : memref<2x2xf32, #tpu.memory_space<vmem>>, vector<2x2xf32>
    tpu.vector_store %arg20[%c0_139, %c0_140], %306 {strides = array<i32>} : memref<2x2xf32, #tpu.memory_space<vmem>>, vector<2x2xf32>,
    return
  }
}

</mosaic_0001>

<bundles_post_ra>
// kernel: mixed_qat_bert_forward.1
= control target key start
LH: loop header
LB: loop body
LE: loop exit
PB: predicated region body
PF: predicated region fallthrough
CT: control target
= control target key end

     0   :  { %s3211_s0 = inlined_call_operand.vmem [shape: f32[16,32], index: 0, kind: input, shape index: {}]   ;;  %s3212_s1 = inlined_call_operand.vmem [shape: f32[2,1,8], index: 1, kind: input, shape index: {}]   ;;  %s3213_s2 = inlined_call_operand.vmem [shape: f32[1,32], index: 2, kind: input, shape index: {}]   ;;  %s3214_s3 = inlined_call_operand.vmem [shape: f32[1,32], index: 3, kind: input, shape index: {}]   ;;  %s3215_s4 = inlined_call_operand.vmem [shape: bf16[2,32,96], index: 4, kind: input, shape index: {}]   ;;  %s3216_s5 = inlined_call_operand.vmem [shape: f32[2,1,96], index: 5, kind: input, shape index: {}]   ;;  %s3217_s6 = inlined_call_operand.vmem [shape: bf16[2,32,32], index: 6, kind: input, shape index: {}]   ;;  %s3218_s7 = inlined_call_operand.vmem [shape: f32[2,1,32], index: 7, kind: input, shape index: {}]   ;;  %s3219_s8 = inlined_call_operand.vmem [shape: f32[2,1,32], index: 8, kind: input, shape index: {}]   ;;  %s3220_s9 = inlined_call_operand.vmem [shape: f32[2,1,32], index: 9, kind: input, shape index: {}]   ;;  %s3221_s10 = inlined_call_operand.vmem [shape: bf16[2,32,128], index: 10, kind: input, shape index: {}]   ;;  %s3222_s11 = inlined_call_operand.vmem [shape: f32[2,1,128], index: 11, kind: input, shape index: {}]   ;;  %s3223_s12 = inlined_call_operand.vmem [shape: bf16[2,128,32], index: 12, kind: input, shape index: {}]   ;;  %s3224_s13 = inlined_call_operand.vmem [shape: f32[2,1,32], index: 13, kind: input, shape index: {}]   ;;  %s3225_s14 = inlined_call_operand.vmem [shape: f32[2,1,32], index: 14, kind: input, shape index: {}]   ;;  %s3226_s15 = inlined_call_operand.vmem [shape: f32[2,1,32], index: 15, kind: input, shape index: {}]   ;;  %s3227_s16 = inlined_call_operand.vmem [shape: f32[32,32], index: 16, kind: input, shape index: {}]   ;;  %s3228_s17 = inlined_call_operand.vmem [shape: f32[1,32], index: 17, kind: input, shape index: {}]   ;;  %s3229_s18 = inlined_call_operand.vmem [shape: f32[32,2], index: 18, kind: input, shape index: {}]   ;;  %s3230_s19 = inlined_call_operand.vmem [shape: f32[1,2], index: 19, kind: input, shape index: {}]   ;;  %s3231_s20 = inlined_call_operand.hbm [shape: f32[2,2], index: 20, kind: output, shape index: {}]  }
   0x1   :  { %3235 = sst [smem:[#allocation5_spill]] %s3211_s0 }
   0x2   :  { %3236 = sst [smem:[#allocation6_spill]] %s3212_s1 }
   0x3   :  { %3237 = sst [smem:[#allocation7_spill]] %s3213_s2 }
   0x4   :  { %3238 = sst [smem:[#allocation8_spill]] %s3214_s3 }
   0x5   :  { %3239 = sst [smem:[#allocation9_spill]] %s3215_s4 }
   0x6   :  { %s3240_s23 = sld [smem:[#allocation5_spill]]  ;;  %vm71_vm0 = vcmask 261120  }
   0xc   :  { %v67_v0 = vld [vmem:[%s3240_s23] sm:$0xff]  ;;  %v68_v1 = vld [vmem:[%s3240_s23 + $0x8] sm:$0xff] }
   0xd   :  { %v72_v2 = vsel %vm71_vm0, %v67_v0, 0.0  ;;  %v75_v3 = vsel %vm71_vm0, %v68_v1, 0.0 }
   0xe   :  { %73 = vadd.xlane.f32.xlu0 %v72_v2 }
  0x12   :  { %76 = vadd.xlane.f32.xlu0 %v75_v3 }
  0x13   :  { %25 = vsyncpa [#allocation3], 0  ;;  %s3241_s26 = sld [smem:[#allocation9_spill]]  ;;  %v2642_v15 = vmov 0.0   ;;  %vm2643_vm1 = vmmov 0   ;;  %s2644_s24 = smov 112  }
  0x14   :  { %2307 = vmatprep.subr.bf16.mxu1 %v2642_v15  ;;  %2311 = vmatprep.mubr.msk.bf16.mxu1 %vm2643_vm1, %v2642_v15  ;;  %s3242_s30 = sld [smem:[#allocation7_spill]]  ;;  %v2121_v34 = vld [vmem:[%s3216_s5] ss:$0 sm:$0xff]  ;;  %s2645_s2 = smov 96   ;;  %vm220_vm2 = vcmask 130048   ;;  %vm414_vm3 = vcmask 64512  }
  0x15   :  { %2321 = vmatprep.subr.bf16.mxu0 %v2642_v15  ;;  %2323 = vmatprep.mubr.msk.bf16.mxu0 %vm2643_vm1, %v2642_v15  ;;  %s3243_s1 = sld [smem:[#allocation8_spill]]  ;;  %s2646_s29 = smov 64   ;;  %vm468_vm4 = vcmask 1043456   ;;  %vm1944_vm5 = vcmask 1041409   ;;  %vm2103_vm6 = vcmask 9216  }
  0x16   :  { %s3244_s27 = sld [smem:[#allocation6_spill]]  ;;  %s2647_s22 = smov 16  }
  0x19   :  { %v2530_v14 = vld [vmem:[%s3241_s26 + $0x8] sm:$0xff]   ;;  %v2531_v16 = vld [vmem:[%s3241_s26] sm:$0xff]  }
  0x1a   :  { %2308 = vmatpush3.bf16.msra.mxu1 %v2530_v14  ;;  %v2119_v25 = vld [vmem:[%s3242_s30] ss:$0 sm:$0xff] }
  0x1b   :  { %2309 = vmatprep.subr.bf16.mxu1 %v2642_v15  ;;  %v2120_v29 = vld [vmem:[%s3243_s1] ss:$0 sm:$0xff] }
  0x1c   :  { %v2837_v63 = vld [vmem:[%s3244_s27] ss:$0 sm:$0xff]  ;;  %v2843_v3 = vld [vmem:[%s3244_s27 + $0x1] ss:$0 sm:$0xff] }
  0x1e   :  { %2310 = vmatpush3.bf16.msra.mxu1 %v2531_v16 }
  0x1f   :  { %2315 = vmatprep.subr.bf16.mxu1 %v2642_v15 }
  0x97   :  { %v74_v4 = vpop.xlane.xlu0 %73 }
  0x98   :  { %v79_v5 = vmul.f32 0.03125, %v74_v4 }
  0x9a   :  { %v81_v6 = vsub.f32 %v67_v0, %v79_v5 }
  0x9b   :  { %v77_v7 = vpop.xlane.xlu0 %76 }
  0x9c   :  { %v80_v8 = vmul.f32 0.03125, %v77_v7  ;;  %v83_v9 = vmul.f32 %v81_v6, %v81_v6 }
  0x9e   :  { %v82_v10 = vsub.f32 %v68_v1, %v80_v8  ;;  %v85_v11 = vsel %vm71_vm0, %v83_v9, 0.0 }
  0x9f   :  { %86 = vadd.xlane.f32.xlu1 %v85_v11 }
  0xa0   :  { %v84_v12 = vmul.f32 %v82_v10, %v82_v10 }
  0xa2   :  { %v88_v13 = vsel %vm71_vm0, %v84_v12, 0.0 }
  0xa3   :  { %89 = vadd.xlane.f32.xlu1 %v88_v13 }
 0x128   :  { %v87_v17 = vpop.xlane.xlu1 %86 }
 0x129   :  { %v91_v18 = vmul.f32 0.03125, %v87_v17 }
 0x12b   :  { %v93_v19 = vadd.f32 1e-12, %v91_v18 }
 0x12c   :  { %v90_v20 = vpop.xlane.xlu1 %89 }
 0x12d   :  { %2558 = vrsqrt.f32 %v93_v19  ;;  %v92_v21 = vmul.f32 0.03125, %v90_v20 }
 0x12f   :  { %v94_v22 = vadd.f32 1e-12, %v92_v21 }
 0x131   :  { %2560 = vrsqrt.f32 %v94_v22 }
 0x13a   :  { %v2559_v23 = vpop.eup %2558 }
 0x13b   :  { %v97_v24 = vmul.f32 %v2559_v23, %v81_v6 }
 0x13d   :  { %v105_v28 = vmul.f32 %v2119_v25, %v97_v24 }
 0x13e   :  { %v2561_v26 = vpop.eup %2560 }
 0x13f   :  { %v98_v27 = vmul.f32 %v2561_v26, %v82_v10  ;;  %v2784_v31 = vadd.f32 %v2120_v29, %v105_v28 }
 0x141   :  { %v106_v30 = vmul.f32 %v2119_v25, %v98_v27 }
 0x143   :  { %v2786_v32 = vadd.f32 %v2120_v29, %v106_v30 }
 0x145   :  { %v117_v33 = vpack.c.bf16 %v2786_v32, %v2784_v31 }
 0x147   :  { %2312 = vmatmul.mubr.msk.bf16.vlgmr.msra.gmra.mxu1 %vm71_vm0, %v117_v33 }
 0x148   :  { %2317 = vmatprep.mubr.msk.bf16.mxu1 %vm2643_vm1, %v2642_v15 }
 0x207   :  { %v178_v35 = vpop.f32.mrf.mxu1 }
 0x208   :  { %v179_v36 = vadd.f32 %v2121_v34, %v178_v35 }
 0x209   :  { %v2313_v37 = vpop.f32.mrf.mxu1 }
 0x20a   :  { %187 = vrot.lane.b32.xlu0 %v179_v36, %s2644_s24  ;;  %v2798_v41 = vpack.c.bf16 %v179_v36, %v179_v36  ;;  %v193_v49 = vmul.f32 0.25, %v179_v36 }
 0x20b   :  { %v181_v38 = vpop.f32.mrf.mxu1 }
 0x20c   :  { %v182_v39 = vadd.f32 %v2121_v34, %v181_v38  ;;  %v197_v52 = vpack.c.bf16 %v193_v49, %v193_v49 }
 0x20d   :  { %v2314_v40 = vpop.f32.mrf.mxu1 }
 0x20e   :  { %189 = vrot.lane.b32.xlu1 %v182_v39, %s2644_s24  ;;  %v2802_v42 = vpack.c.bf16 %v182_v39, %v182_v39  ;;  %v194_v53 = vmul.f32 0.25, %v182_v39 }
 0x210   :  { %v198_v54 = vpack.c.bf16 %v194_v53, %v194_v53 }
 0x212   :  { %218 = vrot.lane.b32.xlu1 %v2798_v41, %s2645_s2 }
 0x216   :  { %268 = vrot.lane.b32.xlu1 %v2802_v42, %s2645_s2 }
 0x27c   :  { %v188_v43 = vpop.permute.xlu0 %187 }
 0x27d   :  { %v2806_v44 = vpack.c.bf16 %v188_v43, %v188_v43  ;;  %v195_v57 = vmul.f32 0.25, %v188_v43 }
 0x27f   :  { %317 = vrot.lane.b32.xlu0 %v2806_v44, %s2645_s2  ;;  %v199_v60 = vpack.c.bf16 %v195_v57, %v195_v57 }
 0x280   :  { %v190_v45 = vpop.permute.xlu1 %189 }
 0x281   :  { %v2810_v46 = vpack.c.bf16 %v190_v45, %v190_v45  ;;  %v196_v61 = vmul.f32 0.25, %v190_v45 }
 0x283   :  { %366 = vrot.lane.b32.xlu1 %v2810_v46, %s2645_s2  ;;  %v200_v62 = vpack.c.bf16 %v196_v61, %v196_v61 }
 0x284   :  { %v219_v47 = vpop.permute.xlu1 %218 }
 0x285   :  { %v225_v48 = vsel %vm220_vm2, %v219_v47, 0 }
 0x286   :  { %2316 = vmatpush3.bf16.xpose.msra.mxu1 %v225_v48 }
 0x287   :  { %2327 = vmatprep.subr.bf16.mxu1 %v2642_v15 }
 0x288   :  { %v269_v50 = vpop.permute.xlu1 %268 }
 0x289   :  { %v274_v51 = vsel %vm220_vm2, %v269_v50, 0 }
 0x28a   :  { %2322 = vmatpush3.bf16.xpose.msra.mxu0 %v274_v51 }
 0x28b   :  { %2333 = vmatprep.subr.bf16.mxu0 %v2642_v15 }
 0x28d   :  { %2318 = vmatmul.mubr.msk.bf16.vlgmr.msra.gmra.mxu1 %vm220_vm2, %v197_v52 }
 0x28e   :  { %2329 = vmatprep.mubr.msk.bf16.mxu1 %vm2643_vm1, %v2642_v15 }
 0x291   :  { %2324 = vmatmul.mubr.msk.bf16.vlgmr.msra.gmra.mxu0 %vm220_vm2, %v198_v54 }
 0x292   :  { %2335 = vmatprep.mubr.msk.bf16.mxu0 %vm2643_vm1, %v2642_v15 }
 0x2f1   :  { %v318_v55 = vpop.permute.xlu0 %317 }
 0x2f2   :  { %v323_v56 = vsel %vm220_vm2, %v318_v55, 0 }
 0x2f3   :  { %2328 = vmatpush3.bf16.xpose.msra.mxu1 %v323_v56 }
 0x2f4   :  { %2339 = vmatprep.subr.bf16.mxu1 %v2642_v15 }
 0x2f5   :  { %v367_v58 = vpop.permute.xlu1 %366 }
 0x2f6   :  { %v372_v59 = vsel %vm220_vm2, %v367_v58, 0 }
 0x2f7   :  { %2334 = vmatpush3.bf16.xpose.msra.mxu0 %v372_v59 }
 0x2f8   :  { %2345 = vmatprep.subr.bf16.mxu0 %v2642_v15 }
 0x2fa   :  { %2330 = vmatmul.mubr.msk.bf16.vlgmr.msra.gmra.mxu1 %vm220_vm2, %v199_v60 }
 0x2fb   :  { %2341 = vmatprep.mubr.msk.bf16.mxu1 %vm2643_vm1, %v2642_v15 }
 0x2fe   :  { %2336 = vmatmul.mubr.msk.bf16.vlgmr.msra.gmra.mxu0 %vm220_vm2, %v200_v62 }
 0x2ff   :  { %2347 = vmatprep.mubr.msk.bf16.mxu0 %vm2643_vm1, %v2642_v15 }
 0x34d   :  { %v261_v0 = vpop.f32.mrf.mxu1 }
 0x34e   :  { %v262_v1 = vadd.f32 %v2837_v63, %v261_v0 }
 0x34f   :  { %v2319_v2 = vpop.f32.mrf.mxu1 }
 0x350   :  { %v415_v4 = vsel %vm414_vm3, %v262_v1, -inf }
 0x351   :  { %v310_v5 = vpop.f32.mrf.mxu0  ;;  %416 = vmax.xlane.f32.xlu0 %v415_v4  ;;  %v264_v6 = vpop.f32.mrf.mxu1 }
 0x352   :  { %v311_v7 = vadd.f32 %v2843_v3, %v310_v5 }
 0x353   :  { %v2320_v8 = vpop.f32.mrf.mxu1  ;;  %v2325_v9 = vpop.f32.mrf.mxu0 }
 0x354   :  { %v418_v10 = vsel %vm414_vm3, %v311_v7, -inf }
 0x355   :  { %419 = vmax.xlane.f32.xlu1 %v418_v10  ;;  %v313_v11 = vpop.f32.mrf.mxu0  ;;  %v2532_v10 = vld [vmem:[%s3217_s6 + $0x8] sm:$0xff]  }
 0x357   :  { %v2326_v12 = vpop.f32.mrf.mxu0 }
 0x3ba   :  { %v359_v13 = vpop.f32.mrf.mxu1 }
 0x3bb   :  { %v360_v14 = vadd.f32 %v2837_v63, %v359_v13 }
 0x3bc   :  { %v2331_v16 = vpop.f32.mrf.mxu1 }
 0x3bd   :  { %v421_v17 = vsel %vm414_vm3, %v360_v14, -inf }
 0x3be   :  { %v408_v18 = vpop.f32.mrf.mxu0  ;;  %422 = vmax.xlane.f32.xlu0 %v421_v17  ;;  %v362_v19 = vpop.f32.mrf.mxu1 }
 0x3bf   :  { %v409_v20 = vadd.f32 %v2843_v3, %v408_v18  ;;  %v2533_v19 = vld [vmem:[%s3217_s6] sm:$0xff]  }
 0x3c0   :  { %v2332_v21 = vpop.f32.mrf.mxu1  ;;  %v2337_v22 = vpop.f32.mrf.mxu0 }
 0x3c1   :  { %v424_v23 = vsel %vm414_vm3, %v409_v20, -inf }
 0x3c2   :  { %v411_v24 = vpop.f32.mrf.mxu0  ;;  %425 = vmax.xlane.f32.xlu0 %v424_v23 }
 0x3c4   :  { %v2338_v25 = vpop.f32.mrf.mxu0 }
 0x3da   :  { %v417_v26 = vpop.xlane.xlu0 %416 }
 0x3db   :  { %v427_v27 = vsub.f32 %v262_v1, %v417_v26 }
 0x3dd   :  { %v431_v28 = vmul.f32 1.442695, %v427_v27 }
 0x3de   :  { %v420_v29 = vpop.xlane.xlu1 %419 }
 0x3df   :  { %2562 = vpow2.f32 %v431_v28  ;;  %v428_v30 = vsub.f32 %v311_v7, %v420_v29 }
 0x3e1   :  { %v433_v33 = vmul.f32 1.442695, %v428_v30 }
 0x3e3   :  { %2564 = vpow2.f32 %v433_v33 }
 0x3ec   :  { %v2563_v34 = vpop.eup %2562 }
 0x3ed   :  { %v439_v35 = vsel %vm414_vm3, %v2563_v34, 0.0 }
 0x3ee   :  { %440 = vadd.xlane.f32.xlu0 %v439_v35 }
 0x3f0   :  { %v2565_v36 = vpop.eup %2564 }
 0x3f1   :  { %v442_v37 = vsel %vm414_vm3, %v2565_v36, 0.0 }
 0x3f2   :  { %443 = vadd.xlane.f32.xlu1 %v442_v37 }
 0x403   :  { %512 = vrot.lane.b32.xlu1 %v2802_v42, %s2646_s29 }
 0x407   :  { %560 = vrot.lane.b32.xlu1 %v2806_v44, %s2646_s29 }
 0x447   :  { %v423_v38 = vpop.xlane.xlu0 %422 }
 0x448   :  { %v429_v39 = vsub.f32 %v360_v14, %v423_v38  ;;  %v2135_v38 = vld [vmem:[%s3218_s7] ss:$0 sm:$0xff] }
 0x44a   :  { %v435_v40 = vmul.f32 1.442695, %v429_v39 }
 0x44b   :  { %v426_v43 = vpop.xlane.xlu0 %425 }
 0x44c   :  { %2566 = vpow2.f32 %v435_v40  ;;  %v430_v45 = vsub.f32 %v409_v20, %v426_v43 }
 0x44e   :  { %v437_v47 = vmul.f32 1.442695, %v430_v45 }
 0x450   :  { %2568 = vpow2.f32 %v437_v47 }
 0x459   :  { %v2567_v48 = vpop.eup %2566 }
 0x45a   :  { %v445_v49 = vsel %vm414_vm3, %v2567_v48, 0.0 }
 0x45b   :  { %446 = vadd.xlane.f32.xlu0 %v445_v49 }
 0x45d   :  { %v2569_v50 = vpop.eup %2568 }
 0x45e   :  { %v448_v51 = vsel %vm414_vm3, %v2569_v50, 0.0 }
 0x45f   :  { %449 = vadd.xlane.f32.xlu1 %v448_v51 }
 0x470   :  { %608 = vrot.lane.b32.xlu1 %v2810_v46, %s2646_s29 }
 0x471   :  { %463 = vrot.lane.b32.xlu0 %v2798_v41, %s2646_s29 }
 0x477   :  { %v441_v46 = vpop.xlane.xlu0 %440 }
 0x47b   :  { %v444_v42 = vpop.xlane.xlu1 %443 }
 0x47c   :  { %2570 = vrcp.f32 %v444_v42 }
 0x47d   :  { %2572 = vrcp.f32 %v441_v46 }
 0x47f   :  { %v513_v44 = vpop.permute.xlu1 %512 }
 0x480   :  { %v518_v52 = vsel %vm468_vm4, %v513_v44, 0 }
 0x481   :  { %2346 = vmatpush3.bf16.msra.mxu0 %v518_v52 }
 0x482   :  { %2357 = vmatprep.subr.bf16.mxu0 %v2642_v15 }
 0x483   :  { %v561_v56 = vpop.permute.xlu1 %560 }
 0x484   :  { %v566_v1 = vsel %vm468_vm4, %v561_v56, 0 }
 0x489   :  { %v2571_v53 = vpop.eup %2570 }
 0x48a   :  { %v456_v54 = vmul.f32 %v2571_v53, %v2565_v36  ;;  %v2573_v41 = vpop.eup %2572 }
 0x48b   :  { %v455_v58 = vmul.f32 %v2573_v41, %v2563_v34 }
 0x48c   :  { %v460_v55 = vpack.c.bf16 %v456_v54, %v456_v54 }
 0x48d   :  { %v459_v62 = vpack.c.bf16 %v455_v58, %v455_v58  ;;  %v2535_v58 = vld [vmem:[%s3221_s10] sm:$0xff]  }
 0x48e   :  { %2348 = vmatmul.mubr.msk.bf16.vlgmr.msra.gmra.mxu0 %vm414_vm3, %v460_v55 }
 0x48f   :  { %2359 = vmatprep.mubr.msk.bf16.mxu0 %vm2643_vm1, %v2642_v15 }
 0x4e4   :  { %v447_v57 = vpop.xlane.xlu0 %446 }
 0x4e5   :  { %2574 = vrcp.f32 %v447_v57 }
 0x4e8   :  { %v450_v59 = vpop.xlane.xlu1 %449  ;;  %v464_v60 = vpop.permute.xlu0 %463 }
 0x4e9   :  { %2576 = vrcp.f32 %v450_v59  ;;  %v470_v61 = vsel %vm468_vm4, %v464_v60, 0 }
 0x4ea   :  { %2340 = vmatpush3.bf16.msra.mxu1 %v470_v61 }
 0x4eb   :  { %2351 = vmatprep.subr.bf16.mxu1 %v2642_v15 }
 0x4ec   :  { %v609_v0 = vpop.permute.xlu1 %608 }
 0x4ed   :  { %v614_v2 = vsel %vm468_vm4, %v609_v0, 0  ;;  %2342 = vmatmul.mubr.msk.bf16.vlgmr.msra.gmra.mxu1 %vm414_vm3, %v459_v62 }
 0x4ee   :  { %2352 = vmatpush3.bf16.msra.mxu1 %v566_v1  ;;  %2358 = vmatpush3.bf16.msra.mxu0 %v614_v2 }
 0x4ef   :  { %2353 = vmatprep.mubr.msk.bf16.mxu1 %vm2643_vm1, %v2642_v15  ;;  %2363 = vmatprep.subr.bf16.mxu1 %v2642_v15 }
 0x4f0   :  { %2371 = vmatprep.subr.bf16.mxu0 %v2642_v15 }
 0x4f2   :  { %v2575_v4 = vpop.eup %2574 }
 0x4f3   :  { %v457_v5 = vmul.f32 %v2575_v4, %v2567_v48 }
 0x4f5   :  { %v461_v6 = vpack.c.bf16 %v457_v5, %v457_v5  ;;  %v2139_v5 = vld [vmem:[%s3219_s8] ss:$0 sm:$0xff] }
 0x4f6   :  { %v2577_v7 = vpop.eup %2576 }
 0x4f7   :  { %2354 = vmatmul.mubr.msk.bf16.vlgmr.msra.gmra.mxu1 %vm414_vm3, %v461_v6  ;;  %v458_v8 = vmul.f32 %v2577_v7, %v2569_v50 }
 0x4f8   :  { %2367 = vmatprep.mubr.msk.bf16.mxu1 %vm2643_vm1, %v2642_v15  ;;  %2364 = vmatpush3.bf16.msra.mxu1 %v2532_v10 }
 0x4f9   :  { %v462_v9 = vpack.c.bf16 %v458_v8, %v458_v8  ;;  %2365 = vmatprep.subr.bf16.mxu1 %v2642_v15 }
 0x4fb   :  { %2360 = vmatmul.mubr.msk.bf16.vlgmr.msra.gmra.mxu0 %vm414_vm3, %v462_v9  ;;  %v2140_v9 = vld [vmem:[%s3220_s9] ss:$0 sm:$0xff] }
 0x4fc   :  { %2375 = vmatprep.mubr.msk.bf16.mxu0 %vm2643_vm1, %v2642_v15  ;;  %2366 = vmatpush3.bf16.msra.mxu1 %v2533_v19  ;;  %v2540_v19 = vld [vmem:[%s3223_s12 + $0x18] sm:$0xff]  }
 0x4fd   :  { %2379 = vmatprep.subr.bf16.mxu1 %v2642_v15 }
 0x54e   :  { %v554_v11 = vpop.f32.mrf.mxu0 }
 0x550   :  { %v2349_v12 = vpop.f32.mrf.mxu0 }
 0x552   :  { %v557_v13 = vpop.f32.mrf.mxu0 }
 0x554   :  { %v2350_v14 = vpop.f32.mrf.mxu0 }
 0x555   :  { %v2536_v14 = vld [vmem:[%s3223_s12 + $0x38] sm:$0xff]  }
 0x5ad   :  { %v506_v16 = vpop.f32.mrf.mxu1 }
 0x5af   :  { %v2343_v17 = vpop.f32.mrf.mxu1 }
 0x5b0   :  { %v2538_v17 = vld [vmem:[%s3223_s12 + $0x28] sm:$0xff]  }
 0x5b1   :  { %v509_v18 = vpop.f32.mrf.mxu1 }
 0x5b2   :  { %v2539_v18 = vld [vmem:[%s3223_s12 + $0x20] sm:$0xff]  }
 0x5b3   :  { %v2344_v20 = vpop.f32.mrf.mxu1 }
 0x5b4   :  { %v2541_v20 = vld [vmem:[%s3223_s12 + $0x10] sm:$0xff]  }
 0x5b7   :  { %v602_v21 = vpop.f32.mrf.mxu1 }
 0x5b9   :  { %v2355_v22 = vpop.f32.mrf.mxu1 }
 0x5ba   :  { %v2543_v22 = vld [vmem:[%s3223_s12] sm:$0xff]  }
 0x5bb   :  { %v605_v23 = vpop.f32.mrf.mxu1  ;;  %v650_v24 = vpop.f32.mrf.mxu0 }
 0x5bc   :  { %v2520_v25 = vpack.i.bf16 %v650_v24, %v602_v21  ;;  %v2542_v21 = vld [vmem:[%s3223_s12 + $0x8] sm:$0xff]   ;;  %v2141_v23 = vld [vmem:[%s3222_s11] ss:$0 sm:$0xff] }
 0x5bd   :  { %v2356_v26 = vpop.f32.mrf.mxu1  ;;  %v2361_v27 = vpop.f32.mrf.mxu0 }
 0x5be   :  { %2521 = vrot.lane.b32.xlu0 %v2520_v25, %s2647_s22 }
 0x5bf   :  { %v653_v28 = vpop.f32.mrf.mxu0 }
 0x5c1   :  { %v2362_v29 = vpop.f32.mrf.mxu0 }
 0x630   :  { %v2522_v30 = vpop.permute.xlu0 %2521 }
 0x631   :  { %v2524_v33 = vunpack.i.h.bf16 %v2522_v30  ;;  %v2523_v34 = vunpack.i.l.bf16 %v2522_v30 }
 0x633   :  { %v665_v35 = vsel %vm220_vm2, %v554_v11, %v2524_v33  ;;  %v664_v36 = vsel %vm220_vm2, %v506_v16, %v2523_v34  ;;  %v2537_v16 = vld [vmem:[%s3223_s12 + $0x30] sm:$0xff]  }
 0x634   :  { %v666_v37 = vpack.c.bf16 %v665_v35, %v664_v36 }
 0x636   :  { %2368 = vmatmul.mubr.msk.bf16.vlgmr.msra.gmra.mxu1 %vm71_vm0, %v666_v37 }
 0x637   :  { %2395 = vmatprep.mubr.msk.bf16.mxu1 %vm2643_vm1, %v2642_v15  ;;  %2380 = vmatpush3.bf16.msra.mxu1 %v2536_v14 }
 0x638   :  { %2381 = vmatprep.subr.bf16.mxu1 %v2642_v15 }
 0x63b   :  { %2382 = vmatpush3.bf16.msra.mxu1 %v2537_v16 }
 0x63c   :  { %2383 = vmatprep.subr.bf16.mxu1 %v2642_v15 }
 0x63f   :  { %2384 = vmatpush3.bf16.msra.mxu1 %v2538_v17 }
 0x640   :  { %2385 = vmatprep.subr.bf16.mxu1 %v2642_v15 }
 0x643   :  { %2386 = vmatpush3.bf16.msra.mxu1 %v2539_v18 }
 0x644   :  { %2387 = vmatprep.subr.bf16.mxu1 %v2642_v15 }
 0x647   :  { %2388 = vmatpush3.bf16.msra.mxu1 %v2540_v19  ;;  %v2154_v19 = vld [vmem:[%s3225_s14] ss:$0 sm:$0xff] }
 0x648   :  { %2389 = vmatprep.subr.bf16.mxu1 %v2642_v15 }
 0x64b   :  { %2390 = vmatpush3.bf16.msra.mxu1 %v2541_v20 }
 0x64c   :  { %2391 = vmatprep.subr.bf16.mxu1 %v2642_v15 }
 0x64f   :  { %2392 = vmatpush3.bf16.msra.mxu1 %v2542_v21 }
 0x650   :  { %2393 = vmatprep.subr.bf16.mxu1 %v2642_v15 }
 0x653   :  { %2394 = vmatpush3.bf16.msra.mxu1 %v2543_v22 }
 0x654   :  { %2425 = vmatprep.subr.bf16.mxu1 %v2642_v15 }
 0x6f6   :  { %v727_v39 = vpop.f32.mrf.mxu1 }
 0x6f7   :  { %v728_v40 = vadd.f32 %v2135_v38, %v727_v39 }
 0x6f8   :  { %v2369_v43 = vpop.f32.mrf.mxu1 }
 0x6f9   :  { %v734_v45 = vadd.f32 %v728_v40, %v2784_v31 }
 0x6fa   :  { %v730_v47 = vpop.f32.mrf.mxu1 }
 0x6fb   :  { %v731_v48 = vadd.f32 %v2135_v38, %v730_v47  ;;  %v738_v49 = vsel %vm71_vm0, %v734_v45, 0.0 }
 0x6fc   :  { %739 = vadd.xlane.f32.xlu1 %v738_v49  ;;  %v2370_v50 = vpop.f32.mrf.mxu1 }
 0x6fd   :  { %v735_v51 = vadd.f32 %v731_v48, %v2786_v32  ;;  %v2534_v32 = vld [vmem:[%s3221_s10 + $0x8] sm:$0xff]  }
 0x6fe   :  { %2372 = vmatpush3.bf16.msra.mxu0 %v2534_v32 }
 0x6ff   :  { %v741_v42 = vsel %vm71_vm0, %v735_v51, 0.0  ;;  %2373 = vmatprep.subr.bf16.mxu0 %v2642_v15 }
 0x700   :  { %742 = vadd.xlane.f32.xlu0 %v741_v42 }
 0x702   :  { %2374 = vmatpush3.bf16.msra.mxu0 %v2535_v58 }
 0x703   :  { %2399 = vmatprep.subr.bf16.mxu0 %v2642_v15 }
 0x785   :  { %v740_v44 = vpop.xlane.xlu1 %739 }
 0x786   :  { %v744_v52 = vmul.f32 0.03125, %v740_v44 }
 0x788   :  { %v746_v53 = vsub.f32 %v734_v45, %v744_v52 }
 0x789   :  { %v743_v54 = vpop.xlane.xlu0 %742 }
 0x78a   :  { %v745_v55 = vmul.f32 0.03125, %v743_v54  ;;  %v748_v46 = vmul.f32 %v746_v53, %v746_v53 }
 0x78c   :  { %v747_v41 = vsub.f32 %v735_v51, %v745_v55  ;;  %v750_v31 = vsel %vm71_vm0, %v748_v46, 0.0 }
 0x78d   :  { %751 = vadd.xlane.f32.xlu0 %v750_v31 }
 0x78e   :  { %v749_v56 = vmul.f32 %v747_v41, %v747_v41 }
 0x790   :  { %v753_v57 = vsel %vm71_vm0, %v749_v56, 0.0 }
 0x791   :  { %754 = vadd.xlane.f32.xlu0 %v753_v57 }
 0x816   :  { %v752_v59 = vpop.xlane.xlu0 %751 }
 0x817   :  { %v756_v60 = vmul.f32 0.03125, %v752_v59 }
 0x819   :  { %v758_v61 = vadd.f32 1e-12, %v756_v60 }
 0x81a   :  { %v755_v62 = vpop.xlane.xlu0 %754 }
 0x81b   :  { %2578 = vrsqrt.f32 %v758_v61  ;;  %v757_v0 = vmul.f32 0.03125, %v755_v62 }
 0x81d   :  { %v759_v1 = vadd.f32 1e-12, %v757_v0 }
 0x81f   :  { %2580 = vrsqrt.f32 %v759_v1 }
 0x828   :  { %v2579_v2 = vpop.eup %2578 }
 0x829   :  { %v762_v4 = vmul.f32 %v2579_v2, %v746_v53  ;;  %v2145_v53 = vld [vmem:[%s3224_s13] ss:$0 sm:$0xff] }
 0x82b   :  { %v770_v8 = vmul.f32 %v2139_v5, %v762_v4 }
 0x82c   :  { %v2581_v6 = vpop.eup %2580 }
 0x82d   :  { %v763_v7 = vmul.f32 %v2581_v6, %v747_v41  ;;  %v2921_v11 = vadd.f32 %v2140_v9, %v770_v8  ;;  %v2544_v8 = vld [vmem:[%s3241_s26 + $0x18] sm:$0xff]  }
 0x82f   :  { %v771_v10 = vmul.f32 %v2139_v5, %v763_v7 }
 0x831   :  { %v2923_v12 = vadd.f32 %v2140_v9, %v771_v10  ;;  %v2545_v9 = vld [vmem:[%s3241_s26 + $0x10] sm:$0xff]  }
 0x833   :  { %v780_v13 = vpack.c.bf16 %v2923_v12, %v2921_v11 }
 0x835   :  { %2376 = vmatmul.mubr.msk.bf16.vlgmr.msra.gmra.mxu0 %vm71_vm0, %v780_v13 }
 0x836   :  { %2403 = vmatprep.mubr.msk.bf16.mxu0 %vm2643_vm1, %v2642_v15  ;;  %2400 = vmatpush3.bf16.msra.mxu0 %v2544_v8 }
 0x837   :  { %2401 = vmatprep.subr.bf16.mxu0 %v2642_v15 }
 0x83a   :  { %2402 = vmatpush3.bf16.msra.mxu0 %v2545_v9 }
 0x83b   :  { %2407 = vmatprep.subr.bf16.mxu0 %v2642_v15 }
 0x8f5   :  { %v841_v24 = vpop.f32.mrf.mxu0 }
 0x8f6   :  { %v842_v25 = vadd.f32 %v2141_v23, %v841_v24 }
 0x8f7   :  { %v2377_v26 = vpop.f32.mrf.mxu0 }
 0x8f8   :  { %v850_v27 = vmul.f32 0.044715, %v842_v25  ;;  %v848_v49 = vmul.f32 0.5, %v842_v25 }
 0x8f9   :  { %v844_v28 = vpop.f32.mrf.mxu0 }
 0x8fa   :  { %v852_v29 = vmul.f32 %v850_v27, %v842_v25  ;;  %v845_v30 = vadd.f32 %v2141_v23, %v844_v28  ;;  %v2155_v23 = vld [vmem:[%s3226_s15] ss:$0 sm:$0xff]  ;;  %v2161_v28 = vld [vmem:[%s3216_s5 + $0x1] ss:$0 sm:$0xff] }
 0x8fb   :  { %v2378_v33 = vpop.f32.mrf.mxu0 }
 0x8fc   :  { %v854_v34 = vmul.f32 %v852_v29, %v842_v25  ;;  %v851_v35 = vmul.f32 0.044715, %v845_v30  ;;  %v849_v50 = vmul.f32 0.5, %v845_v30 }
 0x8fe   :  { %v856_v36 = vadd.f32 %v854_v34, %v842_v25  ;;  %v853_v37 = vmul.f32 %v851_v35, %v845_v30 }
 0x900   :  { %v858_v38 = vmul.f32 0.7978846, %v856_v36  ;;  %v855_v39 = vmul.f32 %v853_v37, %v845_v30 }
 0x902   :  { %2582 = vtanh.f32 %v858_v38  ;;  %v857_v40 = vadd.f32 %v855_v39, %v845_v30 }
 0x904   :  { %v859_v43 = vmul.f32 0.7978846, %v857_v40 }
 0x906   :  { %2584 = vtanh.f32 %v859_v43 }
 0x90f   :  { %v2583_v45 = vpop.eup %2582 }
 0x910   :  { %v862_v47 = vadd.f32 1.0, %v2583_v45 }
 0x912   :  { %v864_v42 = vmul.f32 %v862_v47, %v848_v49 }
 0x913   :  { %v2585_v48 = vpop.eup %2584 }
 0x914   :  { %v863_v51 = vadd.f32 1.0, %v2585_v48 }
 0x916   :  { %v865_v44 = vmul.f32 %v863_v51, %v849_v50 }
 0x918   :  { %v866_v52 = vpack.c.bf16 %v865_v44, %v864_v42 }
 0x91a   :  { %2396 = vmatmul.mubr.bf16.vlgmr.msra.gmra.mxu1 %v866_v52 }
 0x91b   :  { %2427 = vmatprep.mubr.msk.bf16.mxu1 %vm2643_vm1, %v2642_v15 }
 0x9da   :  { %v972_v54 = vpop.f32.mrf.mxu1 }
 0x9db   :  { %v973_v55 = vadd.f32 %v2145_v53, %v972_v54 }
 0x9dc   :  { %v2397_v46 = vpop.f32.mrf.mxu1 }
 0x9dd   :  { %v979_v41 = vadd.f32 %v973_v55, %v2921_v11 }
 0x9de   :  { %v975_v31 = vpop.f32.mrf.mxu1 }
 0x9df   :  { %v976_v56 = vadd.f32 %v2145_v53, %v975_v31  ;;  %v983_v57 = vsel %vm71_vm0, %v979_v41, 0.0 }
 0x9e0   :  { %984 = vadd.xlane.f32.xlu1 %v983_v57  ;;  %v2398_v32 = vpop.f32.mrf.mxu1 }
 0x9e1   :  { %v980_v58 = vadd.f32 %v976_v56, %v2923_v12 }
 0x9e3   :  { %v986_v59 = vsel %vm71_vm0, %v980_v58, 0.0 }
 0x9e4   :  { %987 = vadd.xlane.f32.xlu0 %v986_v59 }
 0xa69   :  { %v985_v60 = vpop.xlane.xlu1 %984 }
 0xa6a   :  { %v989_v61 = vmul.f32 0.03125, %v985_v60 }
 0xa6c   :  { %v991_v62 = vsub.f32 %v979_v41, %v989_v61 }
 0xa6d   :  { %v988_v0 = vpop.xlane.xlu0 %987 }
 0xa6e   :  { %v990_v1 = vmul.f32 0.03125, %v988_v0  ;;  %v993_v2 = vmul.f32 %v991_v62, %v991_v62 }
 0xa70   :  { %v992_v4 = vsub.f32 %v980_v58, %v990_v1  ;;  %v995_v5 = vsel %vm71_vm0, %v993_v2, 0.0 }
 0xa71   :  { %996 = vadd.xlane.f32.xlu1 %v995_v5 }
 0xa72   :  { %v994_v6 = vmul.f32 %v992_v4, %v992_v4 }
 0xa74   :  { %v998_v7 = vsel %vm71_vm0, %v994_v6, 0.0 }
 0xa75   :  { %999 = vadd.xlane.f32.xlu0 %v998_v7 }
 0xafa   :  { %v997_v10 = vpop.xlane.xlu1 %996 }
 0xafb   :  { %v1001_v11 = vmul.f32 0.03125, %v997_v10 }
 0xafd   :  { %v1003_v12 = vadd.f32 1e-12, %v1001_v11 }
 0xafe   :  { %v1000_v13 = vpop.xlane.xlu0 %999 }
 0xaff   :  { %2586 = vrsqrt.f32 %v1003_v12  ;;  %v1002_v14 = vmul.f32 0.03125, %v1000_v13 }
 0xb01   :  { %v1004_v16 = vadd.f32 1e-12, %v1002_v14 }
 0xb03   :  { %2588 = vrsqrt.f32 %v1004_v16 }
 0xb0c   :  { %v2587_v17 = vpop.eup %2586 }
 0xb0d   :  { %v1007_v18 = vmul.f32 %v2587_v17, %v991_v62 }
 0xb0f   :  { %v1015_v22 = vmul.f32 %v2154_v19, %v1007_v18 }
 0xb10   :  { %v2589_v20 = vpop.eup %2588 }
 0xb11   :  { %v1008_v21 = vmul.f32 %v2589_v20, %v992_v4  ;;  %v2990_v25 = vadd.f32 %v2155_v23, %v1015_v22 }
 0xb13   :  { %v1016_v24 = vmul.f32 %v2154_v19, %v1008_v21 }
 0xb15   :  { %v2992_v26 = vadd.f32 %v2155_v23, %v1016_v24 }
 0xb17   :  { %v1025_v27 = vpack.c.bf16 %v2992_v26, %v2990_v25 }
 0xb19   :  { %2404 = vmatmul.mubr.msk.bf16.vlgmr.msra.gmra.mxu0 %vm71_vm0, %v1025_v27 }
 0xb1a   :  { %2409 = vmatprep.mubr.msk.bf16.mxu0 %vm2643_vm1, %v2642_v15 }
 0xbd9   :  { %v1088_v29 = vpop.f32.mrf.mxu0 }
 0xbda   :  { %v1089_v30 = vadd.f32 %v2161_v28, %v1088_v29 }
 0xbdb   :  { %v2405_v33 = vpop.f32.mrf.mxu0 }
 0xbdc   :  { %1097 = vrot.lane.b32.xlu1 %v1089_v30, %s2644_s24  ;;  %v1111_v36 = vpack.c.bf16 %v1089_v30, %v1089_v30  ;;  %v1103_v49 = vmul.f32 0.25, %v1089_v30 }
 0xbdd   :  { %v1091_v34 = vpop.f32.mrf.mxu0 }
 0xbde   :  { %v1092_v35 = vadd.f32 %v2161_v28, %v1091_v34  ;;  %v1107_v51 = vpack.c.bf16 %v1103_v49, %v1103_v49 }
 0xbdf   :  { %v2406_v37 = vpop.f32.mrf.mxu0 }
 0xbe0   :  { %1116 = vrot.lane.b32.xlu1 %v1111_v36, %s2645_s2  ;;  %1099 = vrot.lane.b32.xlu0 %v1092_v35, %s2644_s24  ;;  %v3005_v38 = vpack.c.bf16 %v1092_v35, %v1092_v35  ;;  %v1104_v44 = vmul.f32 0.25, %v1092_v35 }
 0xbe2   :  { %v1108_v52 = vpack.c.bf16 %v1104_v44, %v1104_v44 }
 0xbe4   :  { %1165 = vrot.lane.b32.xlu1 %v3005_v38, %s2645_s2 }
 0xc4e   :  { %v1098_v39 = vpop.permute.xlu1 %1097 }
 0xc4f   :  { %v3009_v40 = vpack.c.bf16 %v1098_v39, %v1098_v39  ;;  %v1105_v55 = vmul.f32 0.25, %v1098_v39 }
 0xc51   :  { %1214 = vrot.lane.b32.xlu1 %v3009_v40, %s2645_s2  ;;  %v1109_v31 = vpack.c.bf16 %v1105_v55, %v1105_v55 }
 0xc52   :  { %v1117_v43 = vpop.permute.xlu1 %1116  ;;  %v1100_v45 = vpop.permute.xlu0 %1099 }
 0xc53   :  { %v1122_v47 = vsel %vm220_vm2, %v1117_v43, 0  ;;  %v3014_v48 = vpack.c.bf16 %v1100_v45, %v1100_v45  ;;  %v1106_v56 = vmul.f32 0.25, %v1100_v45 }
 0xc54   :  { %2408 = vmatpush3.bf16.xpose.msra.mxu0 %v1122_v47 }
 0xc55   :  { %1263 = vrot.lane.b32.xlu0 %v3014_v48, %s2645_s2  ;;  %2413 = vmatprep.subr.bf16.mxu0 %v2642_v15  ;;  %v1110_v57 = vpack.c.bf16 %v1106_v56, %v1106_v56 }
 0xc56   :  { %v1166_v50 = vpop.permute.xlu1 %1165 }
 0xc57   :  { %v1171_v42 = vsel %vm220_vm2, %v1166_v50, 0 }
 0xc5b   :  { %2410 = vmatmul.mubr.msk.bf16.vlgmr.msra.gmra.mxu0 %vm220_vm2, %v1107_v51 }
 0xc5c   :  { %2414 = vmatpush3.bf16.xpose.msra.mxu0 %v1171_v42  ;;  %2415 = vmatprep.mubr.msk.bf16.mxu0 %vm2643_vm1, %v2642_v15 }
 0xc5d   :  { %2419 = vmatprep.subr.bf16.mxu0 %v2642_v15 }
 0xc63   :  { %2416 = vmatmul.mubr.msk.bf16.vlgmr.msra.gmra.mxu0 %vm220_vm2, %v1108_v52 }
 0xc64   :  { %2421 = vmatprep.mubr.msk.bf16.mxu0 %vm2643_vm1, %v2642_v15 }
 0xcc3   :  { %v1215_v53 = vpop.permute.xlu1 %1214 }
 0xcc4   :  { %v1220_v54 = vsel %vm220_vm2, %v1215_v53, 0 }
 0xcc5   :  { %2420 = vmatpush3.bf16.xpose.msra.mxu0 %v1220_v54 }
 0xcc6   :  { %2431 = vmatprep.subr.bf16.mxu0 %v2642_v15 }
 0xcc7   :  { %v1264_v46 = vpop.permute.xlu0 %1263 }
 0xcc8   :  { %v1269_v41 = vsel %vm220_vm2, %v1264_v46, 0 }
 0xcc9   :  { %2426 = vmatpush3.bf16.xpose.msra.mxu1 %v1269_v41 }
 0xcca   :  { %2437 = vmatprep.subr.bf16.mxu1 %v2642_v15 }
 0xccc   :  { %2422 = vmatmul.mubr.msk.bf16.vlgmr.msra.gmra.mxu0 %vm220_vm2, %v1109_v31 }
 0xccd   :  { %2433 = vmatprep.mubr.msk.bf16.mxu0 %vm2643_vm1, %v2642_v15 }
 0xcd0   :  { %2428 = vmatmul.mubr.msk.bf16.vlgmr.msra.gmra.mxu1 %vm220_vm2, %v1110_v57 }
 0xcd1   :  { %2439 = vmatprep.mubr.msk.bf16.mxu1 %vm2643_vm1, %v2642_v15 }
 0xd1b   :  { %v1158_v32 = vpop.f32.mrf.mxu0 }
 0xd1c   :  { %v1159_v58 = vadd.f32 %v2837_v63, %v1158_v32 }
 0xd1d   :  { %v2411_v59 = vpop.f32.mrf.mxu0 }
 0xd1e   :  { %v1311_v60 = vsel %vm414_vm3, %v1159_v58, -inf }
 0xd1f   :  { %1312 = vmax.xlane.f32.xlu1 %v1311_v60  ;;  %v1161_v61 = vpop.f32.mrf.mxu0 }
 0xd21   :  { %v2412_v62 = vpop.f32.mrf.mxu0 }
 0xd23   :  { %v1207_v0 = vpop.f32.mrf.mxu0 }
 0xd24   :  { %v1208_v1 = vadd.f32 %v2843_v3, %v1207_v0 }
 0xd25   :  { %v2417_v2 = vpop.f32.mrf.mxu0 }
 0xd26   :  { %v1314_v4 = vsel %vm414_vm3, %v1208_v1, -inf }
 0xd27   :  { %1315 = vmax.xlane.f32.xlu0 %v1314_v4  ;;  %v1210_v5 = vpop.f32.mrf.mxu0 }
 0xd29   :  { %v2418_v6 = vpop.f32.mrf.mxu0 }
 0xd30   :  { %1359 = vrot.lane.b32.xlu1 %v1111_v36, %s2646_s29 }
 0xd8c   :  { %v1256_v7 = vpop.f32.mrf.mxu0 }
 0xd8d   :  { %v1257_v8 = vadd.f32 %v2837_v63, %v1256_v7 }
 0xd8e   :  { %v2423_v9 = vpop.f32.mrf.mxu0 }
 0xd8f   :  { %v1317_v10 = vsel %vm414_vm3, %v1257_v8, -inf }
 0xd90   :  { %1318 = vmax.xlane.f32.xlu0 %v1317_v10  ;;  %v1259_v11 = vpop.f32.mrf.mxu0  ;;  %v1305_v12 = vpop.f32.mrf.mxu1 }
 0xd91   :  { %v1306_v13 = vadd.f32 %v2843_v3, %v1305_v12 }
 0xd92   :  { %v2424_v14 = vpop.f32.mrf.mxu0  ;;  %v2429_v16 = vpop.f32.mrf.mxu1 }
 0xd93   :  { %v1320_v17 = vsel %vm414_vm3, %v1306_v13, -inf }
 0xd94   :  { %1321 = vmax.xlane.f32.xlu0 %v1320_v17  ;;  %v1308_v18 = vpop.f32.mrf.mxu1 }
 0xd96   :  { %v2430_v19 = vpop.f32.mrf.mxu1 }
 0xda8   :  { %v1313_v20 = vpop.xlane.xlu1 %1312 }
 0xda9   :  { %v1323_v21 = vsub.f32 %v1159_v58, %v1313_v20 }
 0xdab   :  { %v1327_v22 = vmul.f32 1.442695, %v1323_v21 }
 0xdac   :  { %v1360_v23 = vpop.permute.xlu1 %1359 }
 0xdad   :  { %2590 = vpow2.f32 %v1327_v22  ;;  %v1365_v63 = vsel %vm468_vm4, %v1360_v23, 0 }
 0xdae   :  { %2432 = vmatpush3.bf16.msra.mxu0 %v1365_v63 }
 0xdaf   :  { %2443 = vmatprep.subr.bf16.mxu0 %v2642_v15 }
 0xdb0   :  { %v1316_v24 = vpop.xlane.xlu0 %1315 }
 0xdb1   :  { %v1324_v27 = vsub.f32 %v1208_v1, %v1316_v24  ;;  %v2546_v1 = vld [vmem:[%s3217_s6 + $0x18] sm:$0xff]  }
 0xdb3   :  { %v1329_v3 = vmul.f32 1.442695, %v1324_v27 }
 0xdb5   :  { %2592 = vpow2.f32 %v1329_v3 }
 0xdba   :  { %v2591_v28 = vpop.eup %2590 }
 0xdbb   :  { %v1335_v29 = vsel %vm414_vm3, %v2591_v28, 0.0 }
 0xdbc   :  { %1336 = vadd.xlane.f32.xlu1 %v1335_v29 }
 0xdc2   :  { %v2593_v30 = vpop.eup %2592 }
 0xdc3   :  { %v1338_v33 = vsel %vm414_vm3, %v2593_v30, 0.0 }
 0xdc4   :  { %1339 = vadd.xlane.f32.xlu0 %v1338_v33 }
 0xe19   :  { %v1319_v34 = vpop.xlane.xlu0 %1318 }
 0xe1a   :  { %v1325_v35 = vsub.f32 %v1257_v8, %v1319_v34  ;;  %v2547_v8 = vld [vmem:[%s3217_s6 + $0x10] sm:$0xff]  }
 0xe1c   :  { %v1331_v36 = vmul.f32 1.442695, %v1325_v35 }
 0xe1d   :  { %v1322_v37 = vpop.xlane.xlu0 %1321 }
 0xe1e   :  { %2594 = vpow2.f32 %v1331_v36  ;;  %v1326_v39 = vsub.f32 %v1306_v13, %v1322_v37 }
 0xe20   :  { %v1333_v43 = vmul.f32 1.442695, %v1326_v39 }
 0xe22   :  { %2596 = vpow2.f32 %v1333_v43 }
 0xe2b   :  { %v2595_v45 = vpop.eup %2594 }
 0xe2c   :  { %v1341_v47 = vsel %vm414_vm3, %v2595_v45, 0.0 }
 0xe2d   :  { %1342 = vadd.xlane.f32.xlu1 %v1341_v47 }
 0xe2f   :  { %v2597_v49 = vpop.eup %2596 }
 0xe30   :  { %v1344_v50 = vsel %vm414_vm3, %v2597_v49, 0.0 }
 0xe31   :  { %1345 = vadd.xlane.f32.xlu0 %v1344_v50 }
 0xe3e   :  { %1455 = vrot.lane.b32.xlu1 %v3009_v40, %s2646_s29 }
 0xe42   :  { %1503 = vrot.lane.b32.xlu1 %v3014_v48, %s2646_s29 }
 0xe45   :  { %v1337_v51 = vpop.xlane.xlu1 %1336 }
 0xe46   :  { %2598 = vrcp.f32 %v1337_v51 }
 0xe47   :  { %1407 = vrot.lane.b32.xlu0 %v3005_v38, %s2646_s29 }
 0xe4d   :  { %v1340_v53 = vpop.xlane.xlu0 %1339 }
 0xe4e   :  { %2600 = vrcp.f32 %v1340_v53 }
 0xe53   :  { %v2599_v42 = vpop.eup %2598 }
 0xe54   :  { %v1351_v44 = vmul.f32 %v2599_v42, %v2591_v28  ;;  %v2178_v28 = vld [vmem:[%s3218_s7 + $0x1] ss:$0 sm:$0xff] }
 0xe56   :  { %v1355_v52 = vpack.c.bf16 %v1351_v44, %v1351_v44 }
 0xe58   :  { %2434 = vmatmul.mubr.msk.bf16.vlgmr.msra.gmra.mxu0 %vm414_vm3, %v1355_v52 }
 0xe59   :  { %2445 = vmatprep.mubr.msk.bf16.mxu0 %vm2643_vm1, %v2642_v15 }
 0xe5b   :  { %v2601_v40 = vpop.eup %2600 }
 0xe5c   :  { %v1352_v38 = vmul.f32 %v2601_v40, %v2593_v30  ;;  %v2549_v40 = vld [vmem:[%s3221_s10 + $0x10] sm:$0xff]  }
 0xe5e   :  { %v1356_v57 = vpack.c.bf16 %v1352_v38, %v1352_v38 }
 0xeb6   :  { %v1343_v54 = vpop.xlane.xlu1 %1342 }
 0xeb7   :  { %2602 = vrcp.f32 %v1343_v54 }
 0xeba   :  { %v1456_v55 = vpop.permute.xlu1 %1455  ;;  %v1346_v48 = vpop.xlane.xlu0 %1345 }
 0xebb   :  { %v1461_v46 = vsel %vm468_vm4, %v1456_v55, 0  ;;  %2604 = vrcp.f32 %v1346_v48 }
 0xebc   :  { %2444 = vmatpush3.bf16.msra.mxu0 %v1461_v46 }
 0xebd   :  { %2455 = vmatprep.subr.bf16.mxu0 %v2642_v15 }
 0xebe   :  { %v1408_v41 = vpop.permute.xlu0 %1407  ;;  %v1504_v56 = vpop.permute.xlu1 %1503 }
 0xebf   :  { %v1413_v31 = vsel %vm468_vm4, %v1408_v41, 0  ;;  %v1509_v32 = vsel %vm468_vm4, %v1504_v56, 0 }
 0xec0   :  { %2438 = vmatpush3.bf16.msra.mxu1 %v1413_v31 }
 0xec1   :  { %2449 = vmatprep.subr.bf16.mxu1 %v2642_v15 }
 0xec3   :  { %2440 = vmatmul.mubr.msk.bf16.vlgmr.msra.gmra.mxu1 %vm414_vm3, %v1356_v57 }
 0xec4   :  { %v2603_v58 = vpop.eup %2602  ;;  %2450 = vmatpush3.bf16.msra.mxu1 %v1509_v32  ;;  %2451 = vmatprep.mubr.msk.bf16.mxu1 %vm2643_vm1, %v2642_v15  ;;  %v2184_v32 = vld [vmem:[%s3219_s8 + $0x1] ss:$0 sm:$0xff] }
 0xec5   :  { %v1353_v59 = vmul.f32 %v2603_v58, %v2595_v45  ;;  %2463 = vmatprep.subr.bf16.mxu1 %v2642_v15 }
 0xec7   :  { %v1357_v60 = vpack.c.bf16 %v1353_v59, %v1353_v59 }
 0xec8   :  { %v2605_v61 = vpop.eup %2604 }
 0xec9   :  { %2446 = vmatmul.mubr.msk.bf16.vlgmr.msra.gmra.mxu0 %vm414_vm3, %v1357_v60  ;;  %v1354_v62 = vmul.f32 %v2605_v61, %v2597_v49  ;;  %v2185_v61 = vld [vmem:[%s3220_s9 + $0x1] ss:$0 sm:$0xff] }
 0xeca   :  { %2459 = vmatprep.mubr.msk.bf16.mxu0 %vm2643_vm1, %v2642_v15  ;;  %2456 = vmatpush3.bf16.msra.mxu0 %v2546_v1 }
 0xecb   :  { %v1358_v0 = vpack.c.bf16 %v1354_v62, %v1354_v62  ;;  %2457 = vmatprep.subr.bf16.mxu0 %v2642_v15 }
 0xecd   :  { %2452 = vmatmul.mubr.msk.bf16.vlgmr.msra.gmra.mxu1 %vm414_vm3, %v1358_v0 }
 0xece   :  { %2467 = vmatprep.mubr.msk.bf16.mxu1 %vm2643_vm1, %v2642_v15  ;;  %2458 = vmatpush3.bf16.msra.mxu0 %v2547_v8  ;;  %v2554_v8 = vld [vmem:[%s3223_s12 + $0x58] sm:$0xff]  }
 0xecf   :  { %2471 = vmatprep.subr.bf16.mxu0 %v2642_v15 }
 0xf18   :  { %v1401_v2 = vpop.f32.mrf.mxu0 }
 0xf1a   :  { %v2435_v4 = vpop.f32.mrf.mxu0 }
 0xf1b   :  { %v2550_v4 = vld [vmem:[%s3223_s12 + $0x78] sm:$0xff]  }
 0xf1c   :  { %v1404_v5 = vpop.f32.mrf.mxu0 }
 0xf1d   :  { %v2551_v5 = vld [vmem:[%s3223_s12 + $0x70] sm:$0xff]  }
 0xf1e   :  { %v2436_v6 = vpop.f32.mrf.mxu0 }
 0xf1f   :  { %v2552_v6 = vld [vmem:[%s3223_s12 + $0x68] sm:$0xff]  }
 0xf83   :  { %v1449_v7 = vpop.f32.mrf.mxu1 }
 0xf85   :  { %v2441_v9 = vpop.f32.mrf.mxu1 }
 0xf86   :  { %v2555_v9 = vld [vmem:[%s3223_s12 + $0x50] sm:$0xff]  }
 0xf87   :  { %v1452_v10 = vpop.f32.mrf.mxu1 }
 0xf88   :  { %v2556_v10 = vld [vmem:[%s3223_s12 + $0x48] sm:$0xff]  }
 0xf89   :  { %v2442_v11 = vpop.f32.mrf.mxu1  ;;  %v1497_v12 = vpop.f32.mrf.mxu0 }
 0xf8a   :  { %v2557_v11 = vld [vmem:[%s3223_s12 + $0x40] sm:$0xff]  }
 0xf8b   :  { %v2447_v13 = vpop.f32.mrf.mxu0 }
 0xf8d   :  { %v1500_v14 = vpop.f32.mrf.mxu0  ;;  %v1545_v16 = vpop.f32.mrf.mxu1 }
 0xf8e   :  { %v2525_v17 = vpack.i.bf16 %v1545_v16, %v1497_v12  ;;  %v2191_v12 = vld [vmem:[%s3222_s11 + $0x1] ss:$0 sm:$0xff] }
 0xf8f   :  { %v2448_v18 = vpop.f32.mrf.mxu0  ;;  %v2453_v19 = vpop.f32.mrf.mxu1 }
 0xf90   :  { %2526 = vrot.lane.b32.xlu1 %v2525_v17, %s2647_s22 }
 0xf91   :  { %v1548_v20 = vpop.f32.mrf.mxu1 }
 0xf93   :  { %v2454_v21 = vpop.f32.mrf.mxu1 }
0x1002   :  { %v2527_v22 = vpop.permute.xlu1 %2526 }
0x1003   :  { %v2529_v23 = vunpack.i.h.bf16 %v2527_v22  ;;  %v2528_v63 = vunpack.i.l.bf16 %v2527_v22 }
0x1005   :  { %v1560_v24 = vsel %vm220_vm2, %v1449_v7, %v2529_v23  ;;  %v1559_v27 = vsel %vm220_vm2, %v1401_v2, %v2528_v63  ;;  %v2553_v7 = vld [vmem:[%s3223_s12 + $0x60] sm:$0xff]  }
0x1006   :  { %v1561_v3 = vpack.c.bf16 %v1560_v24, %v1559_v27 }
0x1008   :  { %2460 = vmatmul.mubr.msk.bf16.vlgmr.msra.gmra.mxu0 %vm71_vm0, %v1561_v3 }
0x1009   :  { %2487 = vmatprep.mubr.msk.bf16.mxu0 %vm2643_vm1, %v2642_v15  ;;  %2472 = vmatpush3.bf16.msra.mxu0 %v2550_v4 }
0x100a   :  { %2473 = vmatprep.subr.bf16.mxu0 %v2642_v15 }
0x100d   :  { %2474 = vmatpush3.bf16.msra.mxu0 %v2551_v5 }
0x100e   :  { %2475 = vmatprep.subr.bf16.mxu0 %v2642_v15 }
0x1011   :  { %2476 = vmatpush3.bf16.msra.mxu0 %v2552_v6 }
0x1012   :  { %2477 = vmatprep.subr.bf16.mxu0 %v2642_v15 }
0x1015   :  { %2478 = vmatpush3.bf16.msra.mxu0 %v2553_v7 }
0x1016   :  { %2479 = vmatprep.subr.bf16.mxu0 %v2642_v15 }
0x1019   :  { %2480 = vmatpush3.bf16.msra.mxu0 %v2554_v8 }
0x101a   :  { %2481 = vmatprep.subr.bf16.mxu0 %v2642_v15 }
0x101d   :  { %2482 = vmatpush3.bf16.msra.mxu0 %v2555_v9  ;;  %v2223_v9 = vld [vmem:[%s3225_s14 + $0x1] ss:$0 sm:$0xff] }
0x101e   :  { %2483 = vmatprep.subr.bf16.mxu0 %v2642_v15 }
0x1021   :  { %2484 = vmatpush3.bf16.msra.mxu0 %v2556_v10 }
0x1022   :  { %2485 = vmatprep.subr.bf16.mxu0 %v2642_v15 }
0x1025   :  { %2486 = vmatpush3.bf16.msra.mxu0 %v2557_v11 }
0x10c8   :  { %v1624_v29 = vpop.f32.mrf.mxu0 }
0x10c9   :  { %v1625_v30 = vadd.f32 %v2178_v28, %v1624_v29 }
0x10ca   :  { %v2461_v33 = vpop.f32.mrf.mxu0 }
0x10cb   :  { %v1631_v34 = vadd.f32 %v1625_v30, %v2990_v25 }
0x10cc   :  { %v1627_v35 = vpop.f32.mrf.mxu0 }
0x10cd   :  { %v1628_v36 = vadd.f32 %v2178_v28, %v1627_v35  ;;  %v1637_v37 = vsel %vm71_vm0, %v1631_v34, 0.0 }
0x10ce   :  { %1638 = vadd.xlane.f32.xlu0 %v1637_v37  ;;  %v2462_v39 = vpop.f32.mrf.mxu0 }
0x10cf   :  { %v1632_v43 = vadd.f32 %v1628_v36, %v2992_v26  ;;  %v2548_v26 = vld [vmem:[%s3221_s10 + $0x18] sm:$0xff]  }
0x10d0   :  { %2464 = vmatpush3.bf16.msra.mxu1 %v2548_v26 }
0x10d1   :  { %v1640_v45 = vsel %vm71_vm0, %v1632_v43, 0.0  ;;  %2465 = vmatprep.subr.bf16.mxu1 %v2642_v15 }
0x10d2   :  { %1641 = vadd.xlane.f32.xlu1 %v1640_v45 }
0x10d4   :  { %2466 = vmatpush3.bf16.msra.mxu1 %v2549_v40 }
0x10d5   :  { %2491 = vmatprep.subr.mxu1 %v2642_v15 }
0x1157   :  { %v1639_v47 = vpop.xlane.xlu0 %1638 }
0x1158   :  { %v1643_v49 = vmul.f32 0.03125, %v1639_v47  ;;  %v2212_v47 = vld [vmem:[%s3224_s13 + $0x1] ss:$0 sm:$0xff] }
0x115a   :  { %v1645_v50 = vsub.f32 %v1631_v34, %v1643_v49 }
0x115b   :  { %v1642_v51 = vpop.xlane.xlu1 %1641 }
0x115c   :  { %v1644_v42 = vmul.f32 0.03125, %v1642_v51  ;;  %v1647_v44 = vmul.f32 %v1645_v50, %v1645_v50 }
0x115e   :  { %v1646_v52 = vsub.f32 %v1632_v43, %v1644_v42  ;;  %v1649_v25 = vsel %vm71_vm0, %v1647_v44, 0.0 }
0x115f   :  { %1650 = vadd.xlane.f32.xlu0 %v1649_v25 }
0x1160   :  { %v1648_v53 = vmul.f32 %v1646_v52, %v1646_v52 }
0x1162   :  { %v1652_v54 = vsel %vm71_vm0, %v1648_v53, 0.0 }
0x1163   :  { %1653 = vadd.xlane.f32.xlu0 %v1652_v54 }
0x11e8   :  { %v1651_v55 = vpop.xlane.xlu0 %1650 }
0x11e9   :  { %v1655_v48 = vmul.f32 0.03125, %v1651_v55 }
0x11eb   :  { %v1657_v46 = vadd.f32 1e-12, %v1655_v48 }
0x11ec   :  { %v1654_v38 = vpop.xlane.xlu0 %1653 }
0x11ed   :  { %2606 = vrsqrt.f32 %v1657_v46  ;;  %v1656_v41 = vmul.f32 0.03125, %v1654_v38 }
0x11ef   :  { %v1658_v31 = vadd.f32 1e-12, %v1656_v41 }
0x11f1   :  { %2608 = vrsqrt.f32 %v1658_v31 }
0x11fa   :  { %v2607_v56 = vpop.eup %2606 }
0x11fb   :  { %v1661_v57 = vmul.f32 %v2607_v56, %v1645_v50 }
0x11fd   :  { %v1669_v60 = vmul.f32 %v2184_v32, %v1661_v57 }
0x11fe   :  { %v2609_v58 = vpop.eup %2608 }
0x11ff   :  { %v1662_v59 = vmul.f32 %v2609_v58, %v1646_v52  ;;  %v1677_v0 = vadd.f32 %v2185_v61, %v1669_v60  ;;  %v1933_v58 = vld [vmem:[%s3227_s16 + $0x18] sm:$0xff]  ;;  %v1931_v60 = vld [vmem:[%s3227_s16 + $0x8] sm:$0xff] }
0x1201   :  { %v1670_v62 = vmul.f32 %v2184_v32, %v1662_v59  ;;  %v1932_v59 = vld [vmem:[%s3227_s16 + $0x10] sm:$0xff] }
0x1203   :  { %v3113_v1 = vadd.f32 %v2185_v61, %v1670_v62  ;;  %v1930_v61 = vld [vmem:[%s3227_s16] sm:$0xff] }
0x1205   :  { %v1679_v2 = vpack.c.bf16 %v3113_v1, %v1677_v0 }
0x1207   :  { %2468 = vmatmul.mubr.msk.bf16.vlgmr.msra.gmra.mxu1 %vm71_vm0, %v1679_v2 }
0x1208   :  { %2499 = vmatprep.mubr.msk.f32.mxu1 %vm2643_vm1, %v2642_v15  ;;  %2492 = vmatpush3.msra.mxu1 %v1933_v58 }
0x1209   :  { %2493 = vmatprep.subr.mxu1 %v2642_v15 }
0x120a   :  { %2494 = vmatpush3.msra.mxu1 %v1932_v59 }
0x120b   :  { %2495 = vmatprep.subr.mxu1 %v2642_v15 }
0x120c   :  { %2496 = vmatpush3.msra.mxu1 %v1931_v60 }
0x120d   :  { %2497 = vmatprep.subr.mxu1 %v2642_v15 }
0x120e   :  { %2498 = vmatpush3.msra.mxu1 %v1930_v61 }
0x120f   :  { %2502 = vmatprep.subr.mxu1 %v2642_v15 }
0x12c7   :  { %v1742_v13 = vpop.f32.mrf.mxu1 }
0x12c8   :  { %v1743_v14 = vadd.f32 %v2191_v12, %v1742_v13  ;;  %v2224_v13 = vld [vmem:[%s3226_s15 + $0x1] ss:$0 sm:$0xff] }
0x12c9   :  { %v2469_v16 = vpop.f32.mrf.mxu1 }
0x12ca   :  { %v1751_v17 = vmul.f32 0.044715, %v1743_v14  ;;  %v1749_v35 = vmul.f32 0.5, %v1743_v14 }
0x12cb   :  { %v1745_v18 = vpop.f32.mrf.mxu1 }
0x12cc   :  { %v1753_v19 = vmul.f32 %v1751_v17, %v1743_v14  ;;  %v1746_v20 = vadd.f32 %v2191_v12, %v1745_v18 }
0x12cd   :  { %v2470_v21 = vpop.f32.mrf.mxu1 }
0x12ce   :  { %v1755_v22 = vmul.f32 %v1753_v19, %v1743_v14  ;;  %v1752_v23 = vmul.f32 0.044715, %v1746_v20  ;;  %v1750_v36 = vmul.f32 0.5, %v1746_v20  ;;  %v2022_v19 = vld [vmem:[%s3229_s18 + $0x18] sm:$0xff]  ;;  %v2020_v21 = vld [vmem:[%s3229_s18 + $0x8] sm:$0xff] }
0x12d0   :  { %v1757_v63 = vadd.f32 %v1755_v22, %v1743_v14  ;;  %v1754_v24 = vmul.f32 %v1752_v23, %v1746_v20  ;;  %v2019_v22 = vld [vmem:[%s3229_s18] sm:$0xff] }
0x12d1   :  { %v2225_v23 = vld [vmem:[%s3228_s17] ss:$0 sm:$0xff] }
0x12d2   :  { %v1759_v27 = vmul.f32 0.7978846, %v1757_v63  ;;  %v1756_v3 = vmul.f32 %v1754_v24, %v1746_v20 }
0x12d4   :  { %2610 = vtanh.f32 %v1759_v27  ;;  %v1758_v28 = vadd.f32 %v1756_v3, %v1746_v20  ;;  %v2021_v20 = vld [vmem:[%s3229_s18 + $0x10] sm:$0xff]  ;;  %s2648_s18 = smov [#allocation2]  }
0x12d5   :  { %s2111_s3 = sshll.u32 %s2648_s18, 4  ;;  %s2112_s3 = int_to_ptr.vmem [resolvable:$true] %s2111_s3 }
0x12d6   :  { %v1760_v29 = vmul.f32 0.7978846, %v1758_v28  ;;  %v2227_v28 = vld [vmem:[%s3230_s19] ss:$0 sm:$0xff]  ;;  %s2620_s17 = scalar_lea.vmem %s2112_s3, 32  ;;  %p2625_p1 = scmp.lt.s32.totalorder %s2112_s3, %s2112_s3 }
0x12d7   :  { %p2621_p0 = scmp.ne.s32.totalorder %s2112_s3, %s2620_s17  ;;  %p2626_p2 = scmp.lt.s32.totalorder %s2620_s17, %s2620_s17 }
0x12d8   :  { %2612 = vtanh.f32 %v1760_v29 }
0x12d9   :  { %p2627_p3 = por %p2626_p2, %p2625_p1 }
0x12db   :  { %p2628_p4 = pnand %p2627_p3, %p2621_p0 }
0x12e1   :  { %v2611_v30 = vpop.eup %2610 }
0x12e2   :  { %v1763_v33 = vadd.f32 1.0, %v2611_v30 }
0x12e4   :  { %v1765_v39 = vmul.f32 %v1763_v33, %v1749_v35 }
0x12e5   :  { %v2613_v34 = vpop.eup %2612 }
0x12e6   :  { %v1764_v37 = vadd.f32 1.0, %v2613_v34 }
0x12e8   :  { %v1766_v43 = vmul.f32 %v1764_v37, %v1750_v36 }
0x12ea   :  { %v1767_v45 = vpack.c.bf16 %v1766_v43, %v1765_v39 }
0x12ec   :  { %2488 = vmatmul.mubr.bf16.vlgmr.msra.gmra.mxu0 %v1767_v45 }
0x13ac   :  { %v1875_v49 = vpop.f32.mrf.mxu0 }
0x13ad   :  { %v1876_v50 = vadd.f32 %v2212_v47, %v1875_v49 }
0x13ae   :  { %v2489_v51 = vpop.f32.mrf.mxu0 }
0x13af   :  { %v1882_v42 = vadd.f32 %v1876_v50, %v1677_v0 }
0x13b0   :  { %v1878_v44 = vpop.f32.mrf.mxu0 }
0x13b1   :  { %v1879_v52 = vadd.f32 %v2212_v47, %v1878_v44  ;;  %v1888_v25 = vsel %vm71_vm0, %v1882_v42, 0.0 }
0x13b2   :  { %1889 = vadd.xlane.f32.xlu1 %v1888_v25  ;;  %v2490_v53 = vpop.f32.mrf.mxu0 }
0x13b3   :  { %v1883_v54 = vadd.f32 %v1879_v52, %v3113_v1 }
0x13b5   :  { %v1891_v26 = vsel %vm71_vm0, %v1883_v54, 0.0 }
0x13b6   :  { %1892 = vadd.xlane.f32.xlu0 %v1891_v26 }
0x143b   :  { %v1890_v40 = vpop.xlane.xlu1 %1889 }
0x143c   :  { %v1894_v55 = vmul.f32 0.03125, %v1890_v40 }
0x143e   :  { %v1896_v48 = vsub.f32 %v1882_v42, %v1894_v55 }
0x143f   :  { %v1893_v46 = vpop.xlane.xlu0 %1892 }
0x1440   :  { %v1895_v38 = vmul.f32 0.03125, %v1893_v46  ;;  %v1898_v41 = vmul.f32 %v1896_v48, %v1896_v48 }
0x1442   :  { %v1897_v31 = vsub.f32 %v1883_v54, %v1895_v38  ;;  %v1900_v56 = vsel %vm71_vm0, %v1898_v41, 0.0 }
0x1443   :  { %1901 = vadd.xlane.f32.xlu1 %v1900_v56 }
0x1444   :  { %v1899_v57 = vmul.f32 %v1897_v31, %v1897_v31 }
0x1446   :  { %v1903_v32 = vsel %vm71_vm0, %v1899_v57, 0.0 }
0x1447   :  { %1904 = vadd.xlane.f32.xlu0 %v1903_v32 }
0x14cc   :  { %v1902_v62 = vpop.xlane.xlu1 %1901 }
0x14cd   :  { %v1906_v0 = vmul.f32 0.03125, %v1902_v62 }
0x14cf   :  { %v1908_v1 = vadd.f32 1e-12, %v1906_v0 }
0x14d0   :  { %v1905_v2 = vpop.xlane.xlu0 %1904 }
0x14d1   :  { %2614 = vrsqrt.f32 %v1908_v1  ;;  %v1907_v4 = vmul.f32 0.03125, %v1905_v2 }
0x14d3   :  { %v1909_v5 = vadd.f32 1e-12, %v1907_v4 }
0x14d5   :  { %2616 = vrsqrt.f32 %v1909_v5 }
0x14de   :  { %v2615_v6 = vpop.eup %2614 }
0x14df   :  { %v1912_v7 = vmul.f32 %v2615_v6, %v1896_v48 }
0x14e1   :  { %v1920_v11 = vmul.f32 %v2223_v9, %v1912_v7 }
0x14e2   :  { %v2617_v8 = vpop.eup %2616 }
0x14e3   :  { %v1913_v10 = vmul.f32 %v2617_v8, %v1897_v31  ;;  %v1928_v16 = vadd.f32 %v2224_v13, %v1920_v11 }
0x14e5   :  { %v1921_v12 = vmul.f32 %v2223_v9, %v1913_v10 }
0x14e7   :  { %v1929_v14 = vadd.f32 %v2224_v13, %v1921_v12 }
0x14e9   :  { %v1943_v17 = vrot.slane %v1929_v14, 7 }
0x14eb   :  { %v1945_v18 = vsel %vm1944_vm5, %v1943_v17, %v1928_v16 }
0x14ec   :  { %2500 = vmatmul.mubr.msk.f32.vlgmr.msra.gmra.mxu1 %vm71_vm0, %v1945_v18 }
0x14ed   :  { %2510 = vmatprep.mubr.msk.f32.mxu1 %vm2643_vm1, %v2642_v15  ;;  %2503 = vmatpush3.msra.mxu1 %v2022_v19 }
0x14ee   :  { %2504 = vmatprep.subr.mxu1 %v2642_v15 }
0x14ef   :  { %2505 = vmatpush3.msra.mxu1 %v2021_v20 }
0x14f0   :  { %2506 = vmatprep.subr.mxu1 %v2642_v15 }
0x14f1   :  { %2507 = vmatpush3.msra.mxu1 %v2020_v21 }
0x14f2   :  { %2508 = vmatprep.subr.mxu1 %v2642_v15 }
0x14f3   :  { %2509 = vmatpush3.msra.mxu1 %v2019_v22 }
0x15ac   :  { %v2014_v63 = vpop.f32.mrf.mxu1 }
0x15ad   :  { %v2015_v24 = vadd.f32 %v2225_v23, %v2014_v63 }
0x15ae   :  { %v2501_v27 = vpop.f32.mrf.mxu1 }
0x15af   :  { %2618 = vtanh.f32 %v2015_v24 }
0x15bc   :  { %v2619_v3 = vpop.eup %2618 }
0x15bd   :  { %2511 = vmatmul.mubr.msk.f32.vlgmr.msra.gmra.mxu1 %vm71_vm0, %v2619_v3 }
0x167d   :  { %v2099_v29 = vpop.f32.mrf.mxu1 }
0x167e   :  { %v2100_v15 = vadd.f32 %v2227_v28, %v2099_v29 }
0x167f   :  { %v2512_v30 = vpop.f32.mrf.mxu1 }
0x1680   :  { %2104 = vst.msk [vmem:[#allocation2] sm:$0x3] %vm2103_vm6, %v2100_v15 }
0x1681   :  { %2631 = shalt.err (!%p2628_p4)
}
0x1682   :  { %2114 = dma.vmem_to_hbm [thread:$0]  %s2112_s3, 32, %s3231_s20, [#allocation3]  }
0x1683   :  { %2640 = dma.done.wait [#allocation3], 32  }
0x1684   :  { %2641 = vsyncadd [#allocation3], 4294967264 }
0x1685   :  { %2118 = vsyncpa [#allocation3], 1 }

</bundles_post_ra>
